<compile_context>
chip_gen: v5e
topology: v5e:2x2
jax: 0.10.0
libtpu: 0.0.40
codegen_flags: <defaults>
</compile_context>

<pallas_src>
import math
from functools import partial

import jax
import jax.numpy as jnp
from jax.experimental import pallas as pl
from jax.experimental.pallas import tpu as pltpu


VMEM_SPEC = pl.BlockSpec(memory_space=pltpu.MemorySpace.VMEM)


# ----------------------------------------------------------------------------
# In-kernel helpers (lane-major layout: (channels, S) with S = B*Hp*Wp on lanes)
# ----------------------------------------------------------------------------
def _shift_tap(xh, k, Wp, S):
    """Shift a lane-major operand so column s holds the (dy,dx) neighbour of s."""
    dy, dx = k // 3, k % 3
    delta = (dy - 1) * Wp + (dx - 1)            # flat-index offset of this tap
    if delta == 0:
        return xh
    # out[:, s] = xh[:, s + delta]   (wrap-around lands only on masked slots)
    return pltpu.roll(xh, shift=(-delta) % S, axis=1)


def _conv3x3_onedot(xh, w, bias_b, masks, Wp, S):
    """3x3 'same' conv: tap-major im2col concat + ONE MXU dot.

    xh row count is a multiple of 8 (f32 sublane tile) so the concat is pure
    vreg stacking.  masks[k] is a pre-broadcast (rows, S) validity mask.
    """
    blocks = []
    for k in range(9):
        shifted = _shift_tap(xh, k, Wp, S)
        # center tap (k == 4) has an all-ones mask -> skip the multiply
        blocks.append(shifted if k == 4 else shifted * masks[k])
    z = jnp.concatenate(blocks, axis=0)                               # (9*rows, S)
    return jnp.dot(w, z, preferred_element_type=jnp.float32) + bias_b


def _conv3x3_accum(xh, w_taps, bias_b, masks, Wp, S):
    """3x3 'same' conv as 9 accumulated small matmuls (never materializes z).

    Used when xh has fewer than 8 rows (a concat would be sublane-ragged).
    w_taps: (9, Cout, C) so per-tap weight slices are free leading-axis indexing.
    """
    acc = bias_b
    for k in range(9):
        shifted = _shift_tap(xh, k, Wp, S)
        if k != 4:
            shifted = shifted * masks[k]
        acc = acc + jnp.dot(w_taps[k], shifted, preferred_element_type=jnp.float32)
    return acc


def _lstm_update(gates, c, hid):
    """ConvLSTMCell state update from pre-activation gates (4*hid, S)."""
    # Two transcendental streams instead of four (EUP is a single unit).
    sig = jax.nn.sigmoid(gates[:3 * hid])
    g = jnp.tanh(gates[3 * hid:])
    i, f, o = sig[:hid], sig[hid:2 * hid], sig[2 * hid:3 * hid]
    c_next = f * c + i * g
    h_next = o * jnp.tanh(c_next)
    return h_next, c_next


# ----------------------------------------------------------------------------
# Fused Pallas kernel: full encoder + decoder + decoder_cnn
# ----------------------------------------------------------------------------
def _squeezenet_kernel(xs_ref, wenc_ref, benc_ref, wdec_ref, bdec_ref,
                       wdecf_ref, wcnn_ref, bcnn_ref, mask9_ref, y_ref,
                       *, seq_len, horizon, hid, cin_pad, Wp):
    S = xs_ref.shape[-1]
    rows_enc = cin_pad + hid          # 8-aligned via host-side channel padding
    rows_dec = 2 * hid

    mask9 = mask9_ref[...]                                            # (9, S)
    # Hoist every per-tap mask broadcast out of the unrolled time loops.
    masks = {
        r: [jnp.broadcast_to(mask9[k:k + 1, :], (r, S)) for k in range(9)]
        for r in sorted({rows_enc, rows_dec, hid})
    }

    wenc = wenc_ref[...]              # (4*hid, 9*rows_enc)  zero cols for padded chans
    wdec = wdec_ref[...]              # (4*hid, 9*rows_dec)
    wdecf = wdecf_ref[...]            # (9, 4*hid, hid)      folded decoder weights
    wcnn = wcnn_ref[...]              # (9, 1, hid)          decoder_cnn per-tap weights
    # Hoist the lane-broadcast of the biases out of the unrolled time loops.
    benc = jnp.broadcast_to(benc_ref[...], (4 * hid, S))
    bdec = jnp.broadcast_to(bdec_ref[...], (4 * hid, S))
    bcnn = jnp.broadcast_to(bcnn_ref[...], (1, S))

    # init_hidden -> zeros; MaxPool2d of zeros is zeros at the pooled size.
    h1 = jnp.zeros((hid, S), jnp.float32)
    c1 = jnp.zeros((hid, S), jnp.float32)
    h2 = jnp.zeros((hid, S), jnp.float32)
    c2 = jnp.zeros((hid, S), jnp.float32)

    # Encoder over the (already pooled, channel-padded) input sequence.
    # TODO(synk): switch to lax.fori_loop carrying (h1, c1) if seq_len grows past ~16
    # (Python unrolling does not bound vreg live ranges); fine at T=4.
    for t in range(seq_len):
        xh = jnp.concatenate([xs_ref[t], h1], axis=0)                 # (rows_enc, S)
        gates = _conv3x3_onedot(xh, wenc, benc, masks[rows_enc], Wp, S)
        h1, c1 = _lstm_update(gates, c1, hid)

    # Decoder step 1: input is the encoder vector h1.
    xh = jnp.concatenate([h1, h2], axis=0)                            # (rows_dec, S)
    gates = _conv3x3_onedot(xh, wdec, bdec, masks[rows_dec], Wp, S)
    h2, c2 = _lstm_update(gates, c2, hid)

    # Decoder steps >= 2: the input aliases h2 (xh = [h2; h2]), so use folded weights
    # with a single hid-row operand; accumulated per-tap matmuls avoid ragged concat.
    for _ in range(horizon - 1):
        gates = _conv3x3_accum(h2, wdecf, bdec, masks[hid], Wp, S)
        h2, c2 = _lstm_update(gates, c2, hid)

    # decoder_cnn: Conv3d(hid->1, (1,3,3), pad (0,1,1)) == per-slice 3x3 conv.
    # Only the LAST decoder slice survives the MaxUnpool3d quirk, so run it once.
    y = _conv3x3_accum(h2, wcnn, bcnn, masks[hid], Wp, S)             # (1, S)
    y_ref[...] = y.astype(y_ref.dtype)


# ----------------------------------------------------------------------------
# Plain-JAX glue (pooling bookkeeping + MaxUnpool scatter)
# ----------------------------------------------------------------------------
def _maxpool2x2_values(x):
    """MaxPool2d(2,2) values for arbitrary leading dims: (..., H, W) -> (..., H/2, W/2)."""
    *lead, H, W = x.shape
    xr = x.reshape(*lead, H // 2, 2, W // 2, 2)
    return xr.max(axis=(-3, -1))


def _maxpool2x2_indices(x2d):
    """Flat H*W MaxPool2d(2,2) indices for a (B, H, W) slab (first max wins, like torch)."""
    B, H, W = x2d.shape
    xw = x2d.reshape(B, H // 2, 2, W // 2, 2)
    xw = jnp.transpose(xw, (0, 1, 3, 2, 4)).reshape(B, H // 2, W // 2, 4)
    loc = jnp.argmax(xw, axis=-1).astype(jnp.int32)
    dy, dx = loc // 2, loc % 2
    ii = jnp.arange(H // 2, dtype=jnp.int32).reshape(1, H // 2, 1)
    jj = jnp.arange(W // 2, dtype=jnp.int32).reshape(1, 1, W // 2)
    return (2 * ii + dy) * W + (2 * jj + dx)              # (B, Hp, Wp)


# ----------------------------------------------------------------------------
# Forward pass (mirrors SqueezeNet.forward / autoencoder)
# ----------------------------------------------------------------------------
@partial(jax.jit, static_argnames=("horizon", "hidden_channels"))
def squeezenet_forward(x, params, horizon, hidden_channels):
    B, T, Cin, H, W = x.shape
    HID = hidden_channels
    Hp, Wp = H // 2, W // 2
    S = B * Hp * Wp
    dtype = x.dtype

    # mask = (sum_t x > 0) ? 1 : 0, shape (B, 1, Cin, H, W)
    mask = jnp.where(jnp.sum(x, axis=1) > 0, 1.0, 0.0).astype(dtype)[:, None]

    # MaxPool2d(2,2) values for every timestep (one vectorized op); lane-major layout
    # (T, C, B*Hp*Wp) so the spatial axis sits on lanes inside the kernel.
    xp = _maxpool2x2_values(x)                             # (B, T, Cin, Hp, Wp)
    xs = jnp.transpose(xp, (1, 2, 0, 3, 4)).reshape(T, Cin, S).astype(jnp.float32)

    # Pad the input channel axis so each encoder im2col tap block (Cin_pad + HID rows)
    # is a whole number of f32 vregs (8 sublanes); matching zero weight columns below.
    cin_pad = Cin + ((-(Cin + HID)) % 8)
    pad_c = cin_pad - Cin
    if pad_c:
        xs = jnp.concatenate([xs, jnp.zeros((T, pad_c, S), jnp.float32)], axis=1)

    w_enc = params["enc_w"].reshape(4 * HID, 9, Cin + HID)
    if pad_c:
        w_enc = jnp.concatenate(
            [w_enc[:, :, :Cin],
             jnp.zeros((4 * HID, 9, pad_c), jnp.float32),
             w_enc[:, :, Cin:]], axis=2)
    w_enc = w_enc.reshape(4 * HID, 9 * (cin_pad + HID))

    # Folded decoder weights for steps >= 2 (xh = [h2; h2]): per tap, sum the
    # enc-channel and h-channel column blocks.  (9, 4*HID, HID) for leading-axis slices.
    w_dec_fold = params["dec_w"].reshape(4 * HID, 9, 2, HID).sum(axis=2)
    w_dec_fold = jnp.transpose(w_dec_fold, (1, 0, 2))

    # decoder_cnn weights per tap for the accumulated-matmul path: (9, 1, HID).
    w_cnn = jnp.transpose(params["cnn_w"].reshape(1, 9, HID), (1, 0, 2))

    # Per-tap validity masks realizing the 3x3 conv's implicit 'same' zero padding
    # (also kills the pltpu.roll wrap-around across row/image boundaries).
    s = jnp.arange(S, dtype=jnp.int32)
    ii = (s // Wp) % Hp
    jj = s % Wp
    taps = []
    for dy in range(3):
        for dx in range(3):
            vi = (ii + (dy - 1) >= 0) & (ii + (dy - 1) < Hp)
            vj = (jj + (dx - 1) >= 0) & (jj + (dx - 1) < Wp)
            taps.append(vi & vj)
    mask9 = jnp.stack(taps).astype(jnp.float32)            # (9, S)

    kernel = partial(_squeezenet_kernel, seq_len=T, horizon=horizon,
                     hid=HID, cin_pad=cin_pad, Wp=Wp)
    # TODO(synk): on v7x, add a leading 'parallel' batch grid axis once B*Hp*Wp >= 256
    # lanes per core; at S=128 a single gridless call keeps lanes dense on one TC.
    y = pl.pallas_call(
        kernel,
        out_shape=jax.ShapeDtypeStruct((1, S), jnp.float32),
        in_specs=[VMEM_SPEC] * 9,
        out_specs=VMEM_SPEC,
    )(xs, w_enc, params["enc_b"], params["dec_w"], params["dec_b"],
      w_dec_fold, w_cnn, params["cnn_b"], mask9)

    # MaxUnpool3d((1,2,2)) fed MaxPool2d indices broadcast over depth: every depth
    # slice scatters into output depth-plane 0; the last slice wins.  Only the last
    # timestep's pool indices are consumed, so compute them just once here.
    # TODO(synk): data-dependent scatter stays in plain JAX (no clean Pallas scatter win).
    idx_last = _maxpool2x2_indices(x[:, T - 1, 0]).reshape(B, Hp * Wp)
    vals = y.reshape(B, Hp * Wp).astype(dtype)
    plane0 = jnp.zeros((B, H * W), dtype).at[
        jnp.arange(B)[:, None], idx_last].set(vals)

    out = jnp.zeros((B, horizon, 1, H, W), dtype)
    out = out.at[:, 0, 0].set(plane0.reshape(B, H, W))
    out = jnp.maximum(out, 0.0)                            # ReLU
    # NOTE: mirrors the PyTorch module's `outputs * mask` broadcast; for in_channels > 1
    # that broadcast changes the channel dim (module quirk) — harmless at Cin == 1.
    out = out * mask
    return out


# ----------------------------------------------------------------------------
# Deterministic parameter init (PyTorch-style uniform bounds), pre-flattened
# into the kernel's im2col weight layout (tap-major, channel-minor).
# ----------------------------------------------------------------------------
def init_params(key, in_channels, hidden_channels):
    HID = hidden_channels

    def conv_uniform(k, cout, cin, kh, kw):
        bound = 1.0 / math.sqrt(cin * kh * kw)
        return jax.random.uniform(k, (cout, cin, kh, kw), jnp.float32, -bound, bound)

    def bias_uniform(k, cout, cin, kh, kw):
        bound = 1.0 / math.sqrt(cin * kh * kw)
        return jax.random.uniform(k, (cout,), jnp.float32, -bound, bound)

    def to_mat(w):
        # (Cout, Cin, 3, 3) -> (Cout, 9*Cin); K ordering = tap-major (dy, dx), cin-minor,
        # matching the in-kernel im2col row ordering.
        cout, cin = w.shape[0], w.shape[1]
        return jnp.transpose(w, (0, 2, 3, 1)).reshape(cout, 9 * cin)

    k = jax.random.split(key, 6)
    # encoder ConvLSTMCell: Conv2d(in+hid -> 4*hid, 3x3), input channels = [x, h]
    w_enc = conv_uniform(k[0], 4 * HID, in_channels + HID, 3, 3)
    b_enc = bias_uniform(k[1], 4 * HID, in_channels + HID, 3, 3)
    # decoder ConvLSTMCell: Conv2d(hid+hid -> 4*hid, 3x3)
    w_dec = conv_uniform(k[2], 4 * HID, HID + HID, 3, 3)
    b_dec = bias_uniform(k[3], 4 * HID, HID + HID, 3, 3)
    # decoder_cnn Conv3d(hid -> 1, (1,3,3)) (depth kernel of size 1 squeezed away)
    w_cnn = conv_uniform(k[4], 1, HID, 3, 3)
    b_cnn = bias_uniform(k[5], 1, HID, 3, 3)

    return {
        "enc_w": to_mat(w_enc), "enc_b": b_enc.reshape(4 * HID, 1),
        "dec_w": to_mat(w_dec), "dec_b": b_dec.reshape(4 * HID, 1),
        "cnn_w": to_mat(w_cnn), "cnn_b": b_cnn.reshape(1, 1),
    }


if __name__ == "__main__":
    key = jax.random.PRNGKey(0)
    kx, kp = jax.random.split(key)

    B, T, CIN, H, W = 2, 4, 1, 16, 16
    HIDDEN = 4
    HORIZON = 3

    x = jax.random.normal(kx, (B, T, CIN, H, W), jnp.float32)
    params = init_params(kp, CIN, HIDDEN)

    out = squeezenet_forward(x, params, horizon=HORIZON, hidden_channels=HIDDEN)
    out = jax.block_until_ready(out)

    assert out.shape == (B, HORIZON, 1, H, W), out.shape
    assert bool(jnp.all(jnp.isfinite(out)))
    print("KERNEL_OK")
</pallas_src>

<mosaic_0001>
module attributes {stable_mosaic.version = 11 : i64} {
  func.func @_squeezenet_kernel(%arg0: memref<4x4x128xf32, #tpu.memory_space<vmem>>, %arg1: memref<16x72xf32, #tpu.memory_space<vmem>>, %arg2: memref<16x1xf32, #tpu.memory_space<vmem>>, %arg3: memref<16x72xf32, #tpu.memory_space<vmem>>, %arg4: memref<16x1xf32, #tpu.memory_space<vmem>>, %arg5: memref<9x16x4xf32, #tpu.memory_space<vmem>>, %arg6: memref<9x1x4xf32, #tpu.memory_space<vmem>>, %arg7: memref<1x1xf32, #tpu.memory_space<vmem>>, %arg8: memref<9x128xf32, #tpu.memory_space<vmem>>, %arg9: memref<1x128xf32, #tpu.memory_space<vmem>>) attributes {dimension_semantics = [], scalar_prefetch = 0 : i64, scratch_operands = 0 : i64, tpu.core_type = #tpu.core_type<tc>} {
    %c0 = arith.constant 0 : index
    %c0_0 = arith.constant 0 : index
    %0 = vector.load %arg8[%c0, %c0_0] : memref<9x128xf32, #tpu.memory_space<vmem>>, vector<9x128xf32>
    %1 = vector.extract_strided_slice %0 {offsets = [0, 0], sizes = [1, 128], strides = [1, 1]} : vector<9x128xf32> to vector<1x128xf32>
    %2 = vector.shape_cast %1 : vector<1x128xf32> to vector<1x128xf32>
    %3 = vector.broadcast %2 : vector<1x128xf32> to vector<4x128xf32>
    %4 = vector.extract_strided_slice %0 {offsets = [1, 0], sizes = [1, 128], strides = [1, 1]} : vector<9x128xf32> to vector<1x128xf32>
    %5 = vector.shape_cast %4 : vector<1x128xf32> to vector<1x128xf32>
    %6 = vector.broadcast %5 : vector<1x128xf32> to vector<4x128xf32>
    %7 = vector.extract_strided_slice %0 {offsets = [2, 0], sizes = [1, 128], strides = [1, 1]} : vector<9x128xf32> to vector<1x128xf32>
    %8 = vector.shape_cast %7 : vector<1x128xf32> to vector<1x128xf32>
    %9 = vector.broadcast %8 : vector<1x128xf32> to vector<4x128xf32>
    %10 = vector.extract_strided_slice %0 {offsets = [3, 0], sizes = [1, 128], strides = [1, 1]} : vector<9x128xf32> to vector<1x128xf32>
    %11 = vector.shape_cast %10 : vector<1x128xf32> to vector<1x128xf32>
    %12 = vector.broadcast %11 : vector<1x128xf32> to vector<4x128xf32>
    %13 = vector.extract_strided_slice %0 {offsets = [5, 0], sizes = [1, 128], strides = [1, 1]} : vector<9x128xf32> to vector<1x128xf32>
    %14 = vector.shape_cast %13 : vector<1x128xf32> to vector<1x128xf32>
    %15 = vector.broadcast %14 : vector<1x128xf32> to vector<4x128xf32>
    %16 = vector.extract_strided_slice %0 {offsets = [6, 0], sizes = [1, 128], strides = [1, 1]} : vector<9x128xf32> to vector<1x128xf32>
    %17 = vector.shape_cast %16 : vector<1x128xf32> to vector<1x128xf32>
    %18 = vector.broadcast %17 : vector<1x128xf32> to vector<4x128xf32>
    %19 = vector.extract_strided_slice %0 {offsets = [7, 0], sizes = [1, 128], strides = [1, 1]} : vector<9x128xf32> to vector<1x128xf32>
    %20 = vector.shape_cast %19 : vector<1x128xf32> to vector<1x128xf32>
    %21 = vector.broadcast %20 : vector<1x128xf32> to vector<4x128xf32>
    %22 = vector.extract_strided_slice %0 {offsets = [8, 0], sizes = [1, 128], strides = [1, 1]} : vector<9x128xf32> to vector<1x128xf32>
    %23 = vector.shape_cast %22 : vector<1x128xf32> to vector<1x128xf32>
    %24 = vector.broadcast %23 : vector<1x128xf32> to vector<4x128xf32>
    %25 = vector.extract_strided_slice %0 {offsets = [0, 0], sizes = [1, 128], strides = [1, 1]} : vector<9x128xf32> to vector<1x128xf32>
    %26 = vector.shape_cast %25 : vector<1x128xf32> to vector<1x128xf32>
    %27 = vector.broadcast %26 : vector<1x128xf32> to vector<8x128xf32>
    %28 = vector.extract_strided_slice %0 {offsets = [1, 0], sizes = [1, 128], strides = [1, 1]} : vector<9x128xf32> to vector<1x128xf32>
    %29 = vector.shape_cast %28 : vector<1x128xf32> to vector<1x128xf32>
    %30 = vector.broadcast %29 : vector<1x128xf32> to vector<8x128xf32>
    %31 = vector.extract_strided_slice %0 {offsets = [2, 0], sizes = [1, 128], strides = [1, 1]} : vector<9x128xf32> to vector<1x128xf32>
    %32 = vector.shape_cast %31 : vector<1x128xf32> to vector<1x128xf32>
    %33 = vector.broadcast %32 : vector<1x128xf32> to vector<8x128xf32>
    %34 = vector.extract_strided_slice %0 {offsets = [3, 0], sizes = [1, 128], strides = [1, 1]} : vector<9x128xf32> to vector<1x128xf32>
    %35 = vector.shape_cast %34 : vector<1x128xf32> to vector<1x128xf32>
    %36 = vector.broadcast %35 : vector<1x128xf32> to vector<8x128xf32>
    %37 = vector.extract_strided_slice %0 {offsets = [5, 0], sizes = [1, 128], strides = [1, 1]} : vector<9x128xf32> to vector<1x128xf32>
    %38 = vector.shape_cast %37 : vector<1x128xf32> to vector<1x128xf32>
    %39 = vector.broadcast %38 : vector<1x128xf32> to vector<8x128xf32>
    %40 = vector.extract_strided_slice %0 {offsets = [6, 0], sizes = [1, 128], strides = [1, 1]} : vector<9x128xf32> to vector<1x128xf32>
    %41 = vector.shape_cast %40 : vector<1x128xf32> to vector<1x128xf32>
    %42 = vector.broadcast %41 : vector<1x128xf32> to vector<8x128xf32>
    %43 = vector.extract_strided_slice %0 {offsets = [7, 0], sizes = [1, 128], strides = [1, 1]} : vector<9x128xf32> to vector<1x128xf32>
    %44 = vector.shape_cast %43 : vector<1x128xf32> to vector<1x128xf32>
    %45 = vector.broadcast %44 : vector<1x128xf32> to vector<8x128xf32>
    %46 = vector.extract_strided_slice %0 {offsets = [8, 0], sizes = [1, 128], strides = [1, 1]} : vector<9x128xf32> to vector<1x128xf32>
    %47 = vector.shape_cast %46 : vector<1x128xf32> to vector<1x128xf32>
    %48 = vector.broadcast %47 : vector<1x128xf32> to vector<8x128xf32>
    %c0_1 = arith.constant 0 : index
    %c0_2 = arith.constant 0 : index
    %49 = vector.load %arg1[%c0_1, %c0_2] : memref<16x72xf32, #tpu.memory_space<vmem>>, vector<16x72xf32>
    %c0_3 = arith.constant 0 : index
    %c0_4 = arith.constant 0 : index
    %50 = vector.load %arg3[%c0_3, %c0_4] : memref<16x72xf32, #tpu.memory_space<vmem>>, vector<16x72xf32>
    %c0_5 = arith.constant 0 : index
    %c0_6 = arith.constant 0 : index
    %c0_7 = arith.constant 0 : index
    %51 = vector.load %arg5[%c0_5, %c0_6, %c0_7] : memref<9x16x4xf32, #tpu.memory_space<vmem>>, vector<9x16x4xf32>
    %c0_8 = arith.constant 0 : index
    %c0_9 = arith.constant 0 : index
    %c0_10 = arith.constant 0 : index
    %52 = vector.load %arg6[%c0_8, %c0_9, %c0_10] : memref<9x1x4xf32, #tpu.memory_space<vmem>>, vector<9x1x4xf32>
    %c0_11 = arith.constant 0 : index
    %c0_12 = arith.constant 0 : index
    %53 = vector.load %arg2[%c0_11, %c0_12] : memref<16x1xf32, #tpu.memory_space<vmem>>, vector<16x1xf32>
    %54 = vector.shape_cast %53 : vector<16x1xf32> to vector<16x1xf32>
    %55 = vector.broadcast %54 : vector<16x1xf32> to vector<16x128xf32>
    %c0_13 = arith.constant 0 : index
    %c0_14 = arith.constant 0 : index
    %56 = vector.load %arg4[%c0_13, %c0_14] : memref<16x1xf32, #tpu.memory_space<vmem>>, vector<16x1xf32>
    %57 = vector.shape_cast %56 : vector<16x1xf32> to vector<16x1xf32>
    %58 = vector.broadcast %57 : vector<16x1xf32> to vector<16x128xf32>
    %c0_15 = arith.constant 0 : index
    %c0_16 = arith.constant 0 : index
    %59 = vector.load %arg7[%c0_15, %c0_16] : memref<1x1xf32, #tpu.memory_space<vmem>>, vector<1x1xf32>
    %60 = vector.shape_cast %59 : vector<1x1xf32> to vector<1x1xf32>
    %61 = vector.broadcast %60 : vector<1x1xf32> to vector<1x128xf32>
    %cst = arith.constant 0.000000e+00 : f32
    %62 = vector.broadcast %cst : f32 to vector<4x128xf32>
    %cst_17 = arith.constant 0.000000e+00 : f32
    %63 = vector.broadcast %cst_17 : f32 to vector<4x128xf32>
    %cst_18 = arith.constant 0.000000e+00 : f32
    %64 = vector.broadcast %cst_18 : f32 to vector<4x128xf32>
    %cst_19 = arith.constant 0.000000e+00 : f32
    %65 = vector.broadcast %cst_19 : f32 to vector<4x128xf32>
    %c0_20 = arith.constant 0 : index
    %c0_21 = arith.constant 0 : index
    %c0_22 = arith.constant 0 : index
    %66 = vector.load %arg0[%c0_20, %c0_21, %c0_22] : memref<4x4x128xf32, #tpu.memory_space<vmem>>, vector<1x4x128xf32>
    %67 = vector.shape_cast %66 : vector<1x4x128xf32> to vector<4x128xf32>
    %68 = tpu.concatenate %67, %62 in 0 : vector<4x128xf32>, vector<4x128xf32> -> vector<8x128xf32>
    %c9_i32 = arith.constant 9 : i32
    %69 = tpu.dynamic_rotate %68 by %c9_i32 dim 1 : vector<8x128xf32>, i32 -> vector<8x128xf32>
    %70 = arith.mulf %69, %27 : vector<8x128xf32>
    %c8_i32 = arith.constant 8 : i32
    %71 = tpu.dynamic_rotate %68 by %c8_i32 dim 1 : vector<8x128xf32>, i32 -> vector<8x128xf32>
    %72 = arith.mulf %71, %30 : vector<8x128xf32>
    %c7_i32 = arith.constant 7 : i32
    %73 = tpu.dynamic_rotate %68 by %c7_i32 dim 1 : vector<8x128xf32>, i32 -> vector<8x128xf32>
    %74 = arith.mulf %73, %33 : vector<8x128xf32>
    %c1_i32 = arith.constant 1 : i32
    %75 = tpu.dynamic_rotate %68 by %c1_i32 dim 1 : vector<8x128xf32>, i32 -> vector<8x128xf32>
    %76 = arith.mulf %75, %36 : vector<8x128xf32>
    %c127_i32 = arith.constant 127 : i32
    %77 = tpu.dynamic_rotate %68 by %c127_i32 dim 1 : vector<8x128xf32>, i32 -> vector<8x128xf32>
    %78 = arith.mulf %77, %39 : vector<8x128xf32>
    %c121_i32 = arith.constant 121 : i32
    %79 = tpu.dynamic_rotate %68 by %c121_i32 dim 1 : vector<8x128xf32>, i32 -> vector<8x128xf32>
    %80 = arith.mulf %79, %42 : vector<8x128xf32>
    %c120_i32 = arith.constant 120 : i32
    %81 = tpu.dynamic_rotate %68 by %c120_i32 dim 1 : vector<8x128xf32>, i32 -> vector<8x128xf32>
    %82 = arith.mulf %81, %45 : vector<8x128xf32>
    %c119_i32 = arith.constant 119 : i32
    %83 = tpu.dynamic_rotate %68 by %c119_i32 dim 1 : vector<8x128xf32>, i32 -> vector<8x128xf32>
    %84 = arith.mulf %83, %48 : vector<8x128xf32>
    %85 = tpu.concatenate %70, %72, %74, %76, %68, %78, %80, %82, %84 in 0 : vector<8x128xf32>, vector<8x128xf32>, vector<8x128xf32>, vector<8x128xf32>, vector<8x128xf32>, vector<8x128xf32>, vector<8x128xf32>, vector<8x128xf32>, vector<8x128xf32> -> vector<72x128xf32>
    %cst_23 = arith.constant dense<0.000000e+00> : vector<16x128xf32>
    %86 = tpu.matmul %49, %85, %cst_23 {dimension_numbers = #tpu.dot_dimension_numbers<[1], [0], [0], [1], [0, 0, 1, 1], [], []>} : vector<16x72xf32>, vector<72x128xf32>, vector<16x128xf32> -> vector<16x128xf32>
    %87 = arith.addf %86, %55 : vector<16x128xf32>
    %88 = vector.extract_strided_slice %87 {offsets = [0, 0], sizes = [12, 128], strides = [1, 1]} : vector<16x128xf32> to vector<12x128xf32>
    %89 = arith.negf %88 : vector<12x128xf32>
    %90 = math.exp %89 : vector<12x128xf32>
    %cst_24 = arith.constant 1.000000e+00 : f32
    %91 = vector.broadcast %cst_24 : f32 to vector<12x128xf32>
    %92 = arith.addf %91, %90 : vector<12x128xf32>
    %93 = arith.divf %91, %92 : vector<12x128xf32>
    %94 = vector.extract_strided_slice %87 {offsets = [12, 0], sizes = [4, 128], strides = [1, 1]} : vector<16x128xf32> to vector<4x128xf32>
    %95 = math.tanh %94 : vector<4x128xf32>
    %96 = vector.extract_strided_slice %93 {offsets = [0, 0], sizes = [4, 128], strides = [1, 1]} : vector<12x128xf32> to vector<4x128xf32>
    %97 = vector.extract_strided_slice %93 {offsets = [4, 0], sizes = [4, 128], strides = [1, 1]} : vector<12x128xf32> to vector<4x128xf32>
    %98 = vector.extract_strided_slice %93 {offsets = [8, 0], sizes = [4, 128], strides = [1, 1]} : vector<12x128xf32> to vector<4x128xf32>
    %99 = arith.mulf %97, %63 : vector<4x128xf32>
    %100 = arith.mulf %96, %95 : vector<4x128xf32>
    %101 = arith.addf %99, %100 : vector<4x128xf32>
    %102 = math.tanh %101 : vector<4x128xf32>
    %103 = arith.mulf %98, %102 : vector<4x128xf32>
    %c1 = arith.constant 1 : index
    %c0_25 = arith.constant 0 : index
    %c0_26 = arith.constant 0 : index
    %104 = vector.load %arg0[%c1, %c0_25, %c0_26] : memref<4x4x128xf32, #tpu.memory_space<vmem>>, vector<1x4x128xf32>
    %105 = vector.shape_cast %104 : vector<1x4x128xf32> to vector<4x128xf32>
    %106 = tpu.concatenate %105, %103 in 0 : vector<4x128xf32>, vector<4x128xf32> -> vector<8x128xf32>
    %c9_i32_27 = arith.constant 9 : i32
    %107 = tpu.dynamic_rotate %106 by %c9_i32_27 dim 1 : vector<8x128xf32>, i32 -> vector<8x128xf32>
    %108 = arith.mulf %107, %27 : vector<8x128xf32>
    %c8_i32_28 = arith.constant 8 : i32
    %109 = tpu.dynamic_rotate %106 by %c8_i32_28 dim 1 : vector<8x128xf32>, i32 -> vector<8x128xf32>
    %110 = arith.mulf %109, %30 : vector<8x128xf32>
    %c7_i32_29 = arith.constant 7 : i32
    %111 = tpu.dynamic_rotate %106 by %c7_i32_29 dim 1 : vector<8x128xf32>, i32 -> vector<8x128xf32>
    %112 = arith.mulf %111, %33 : vector<8x128xf32>
    %c1_i32_30 = arith.constant 1 : i32
    %113 = tpu.dynamic_rotate %106 by %c1_i32_30 dim 1 : vector<8x128xf32>, i32 -> vector<8x128xf32>
    %114 = arith.mulf %113, %36 : vector<8x128xf32>
    %c127_i32_31 = arith.constant 127 : i32
    %115 = tpu.dynamic_rotate %106 by %c127_i32_31 dim 1 : vector<8x128xf32>, i32 -> vector<8x128xf32>
    %116 = arith.mulf %115, %39 : vector<8x128xf32>
    %c121_i32_32 = arith.constant 121 : i32
    %117 = tpu.dynamic_rotate %106 by %c121_i32_32 dim 1 : vector<8x128xf32>, i32 -> vector<8x128xf32>
    %118 = arith.mulf %117, %42 : vector<8x128xf32>
    %c120_i32_33 = arith.constant 120 : i32
    %119 = tpu.dynamic_rotate %106 by %c120_i32_33 dim 1 : vector<8x128xf32>, i32 -> vector<8x128xf32>
    %120 = arith.mulf %119, %45 : vector<8x128xf32>
    %c119_i32_34 = arith.constant 119 : i32
    %121 = tpu.dynamic_rotate %106 by %c119_i32_34 dim 1 : vector<8x128xf32>, i32 -> vector<8x128xf32>
    %122 = arith.mulf %121, %48 : vector<8x128xf32>
    %123 = tpu.concatenate %108, %110, %112, %114, %106, %116, %118, %120, %122 in 0 : vector<8x128xf32>, vector<8x128xf32>, vector<8x128xf32>, vector<8x128xf32>, vector<8x128xf32>, vector<8x128xf32>, vector<8x128xf32>, vector<8x128xf32>, vector<8x128xf32> -> vector<72x128xf32>
    %cst_35 = arith.constant dense<0.000000e+00> : vector<16x128xf32>
    %124 = tpu.matmul %49, %123, %cst_35 {dimension_numbers = #tpu.dot_dimension_numbers<[1], [0], [0], [1], [0, 0, 1, 1], [], []>} : vector<16x72xf32>, vector<72x128xf32>, vector<16x128xf32> -> vector<16x128xf32>
    %125 = arith.addf %124, %55 : vector<16x128xf32>
    %126 = vector.extract_strided_slice %125 {offsets = [0, 0], sizes = [12, 128], strides = [1, 1]} : vector<16x128xf32> to vector<12x128xf32>
    %127 = arith.negf %126 : vector<12x128xf32>
    %128 = math.exp %127 : vector<12x128xf32>
    %cst_36 = arith.constant 1.000000e+00 : f32
    %129 = vector.broadcast %cst_36 : f32 to vector<12x128xf32>
    %130 = arith.addf %129, %128 : vector<12x128xf32>
    %131 = arith.divf %129, %130 : vector<12x128xf32>
    %132 = vector.extract_strided_slice %125 {offsets = [12, 0], sizes = [4, 128], strides = [1, 1]} : vector<16x128xf32> to vector<4x128xf32>
    %133 = math.tanh %132 : vector<4x128xf32>
    %134 = vector.extract_strided_slice %131 {offsets = [0, 0], sizes = [4, 128], strides = [1, 1]} : vector<12x128xf32> to vector<4x128xf32>
    %135 = vector.extract_strided_slice %131 {offsets = [4, 0], sizes = [4, 128], strides = [1, 1]} : vector<12x128xf32> to vector<4x128xf32>
    %136 = vector.extract_strided_slice %131 {offsets = [8, 0], sizes = [4, 128], strides = [1, 1]} : vector<12x128xf32> to vector<4x128xf32>
    %137 = arith.mulf %135, %101 : vector<4x128xf32>
    %138 = arith.mulf %134, %133 : vector<4x128xf32>
    %139 = arith.addf %137, %138 : vector<4x128xf32>
    %140 = math.tanh %139 : vector<4x128xf32>
    %141 = arith.mulf %136, %140 : vector<4x128xf32>
    %c2 = arith.constant 2 : index
    %c0_37 = arith.constant 0 : index
    %c0_38 = arith.constant 0 : index
    %142 = vector.load %arg0[%c2, %c0_37, %c0_38] : memref<4x4x128xf32, #tpu.memory_space<vmem>>, vector<1x4x128xf32>
    %143 = vector.shape_cast %142 : vector<1x4x128xf32> to vector<4x128xf32>
    %144 = tpu.concatenate %143, %141 in 0 : vector<4x128xf32>, vector<4x128xf32> -> vector<8x128xf32>
    %c9_i32_39 = arith.constant 9 : i32
    %145 = tpu.dynamic_rotate %144 by %c9_i32_39 dim 1 : vector<8x128xf32>, i32 -> vector<8x128xf32>
    %146 = arith.mulf %145, %27 : vector<8x128xf32>
    %c8_i32_40 = arith.constant 8 : i32
    %147 = tpu.dynamic_rotate %144 by %c8_i32_40 dim 1 : vector<8x128xf32>, i32 -> vector<8x128xf32>
    %148 = arith.mulf %147, %30 : vector<8x128xf32>
    %c7_i32_41 = arith.constant 7 : i32
    %149 = tpu.dynamic_rotate %144 by %c7_i32_41 dim 1 : vector<8x128xf32>, i32 -> vector<8x128xf32>
    %150 = arith.mulf %149, %33 : vector<8x128xf32>
    %c1_i32_42 = arith.constant 1 : i32
    %151 = tpu.dynamic_rotate %144 by %c1_i32_42 dim 1 : vector<8x128xf32>, i32 -> vector<8x128xf32>
    %152 = arith.mulf %151, %36 : vector<8x128xf32>
    %c127_i32_43 = arith.constant 127 : i32
    %153 = tpu.dynamic_rotate %144 by %c127_i32_43 dim 1 : vector<8x128xf32>, i32 -> vector<8x128xf32>
    %154 = arith.mulf %153, %39 : vector<8x128xf32>
    %c121_i32_44 = arith.constant 121 : i32
    %155 = tpu.dynamic_rotate %144 by %c121_i32_44 dim 1 : vector<8x128xf32>, i32 -> vector<8x128xf32>
    %156 = arith.mulf %155, %42 : vector<8x128xf32>
    %c120_i32_45 = arith.constant 120 : i32
    %157 = tpu.dynamic_rotate %144 by %c120_i32_45 dim 1 : vector<8x128xf32>, i32 -> vector<8x128xf32>
    %158 = arith.mulf %157, %45 : vector<8x128xf32>
    %c119_i32_46 = arith.constant 119 : i32
    %159 = tpu.dynamic_rotate %144 by %c119_i32_46 dim 1 : vector<8x128xf32>, i32 -> vector<8x128xf32>
    %160 = arith.mulf %159, %48 : vector<8x128xf32>
    %161 = tpu.concatenate %146, %148, %150, %152, %144, %154, %156, %158, %160 in 0 : vector<8x128xf32>, vector<8x128xf32>, vector<8x128xf32>, vector<8x128xf32>, vector<8x128xf32>, vector<8x128xf32>, vector<8x128xf32>, vector<8x128xf32>, vector<8x128xf32> -> vector<72x128xf32>
    %cst_47 = arith.constant dense<0.000000e+00> : vector<16x128xf32>
    %162 = tpu.matmul %49, %161, %cst_47 {dimension_numbers = #tpu.dot_dimension_numbers<[1], [0], [0], [1], [0, 0, 1, 1], [], []>} : vector<16x72xf32>, vector<72x128xf32>, vector<16x128xf32> -> vector<16x128xf32>
    %163 = arith.addf %162, %55 : vector<16x128xf32>
    %164 = vector.extract_strided_slice %163 {offsets = [0, 0], sizes = [12, 128], strides = [1, 1]} : vector<16x128xf32> to vector<12x128xf32>
    %165 = arith.negf %164 : vector<12x128xf32>
    %166 = math.exp %165 : vector<12x128xf32>
    %cst_48 = arith.constant 1.000000e+00 : f32
    %167 = vector.broadcast %cst_48 : f32 to vector<12x128xf32>
    %168 = arith.addf %167, %166 : vector<12x128xf32>
    %169 = arith.divf %167, %168 : vector<12x128xf32>
    %170 = vector.extract_strided_slice %163 {offsets = [12, 0], sizes = [4, 128], strides = [1, 1]} : vector<16x128xf32> to vector<4x128xf32>
    %171 = math.tanh %170 : vector<4x128xf32>
    %172 = vector.extract_strided_slice %169 {offsets = [0, 0], sizes = [4, 128], strides = [1, 1]} : vector<12x128xf32> to vector<4x128xf32>
    %173 = vector.extract_strided_slice %169 {offsets = [4, 0], sizes = [4, 128], strides = [1, 1]} : vector<12x128xf32> to vector<4x128xf32>
    %174 = vector.extract_strided_slice %169 {offsets = [8, 0], sizes = [4, 128], strides = [1, 1]} : vector<12x128xf32> to vector<4x128xf32>
    %175 = arith.mulf %173, %139 : vector<4x128xf32>
    %176 = arith.mulf %172, %171 : vector<4x128xf32>
    %177 = arith.addf %175, %176 : vector<4x128xf32>
    %178 = math.tanh %177 : vector<4x128xf32>
    %179 = arith.mulf %174, %178 : vector<4x128xf32>
    %c3 = arith.constant 3 : index
    %c0_49 = arith.constant 0 : index
    %c0_50 = arith.constant 0 : index
    %180 = vector.load %arg0[%c3, %c0_49, %c0_50] : memref<4x4x128xf32, #tpu.memory_space<vmem>>, vector<1x4x128xf32>
    %181 = vector.shape_cast %180 : vector<1x4x128xf32> to vector<4x128xf32>
    %182 = tpu.concatenate %181, %179 in 0 : vector<4x128xf32>, vector<4x128xf32> -> vector<8x128xf32>
    %c9_i32_51 = arith.constant 9 : i32
    %183 = tpu.dynamic_rotate %182 by %c9_i32_51 dim 1 : vector<8x128xf32>, i32 -> vector<8x128xf32>
    %184 = arith.mulf %183, %27 : vector<8x128xf32>
    %c8_i32_52 = arith.constant 8 : i32
    %185 = tpu.dynamic_rotate %182 by %c8_i32_52 dim 1 : vector<8x128xf32>, i32 -> vector<8x128xf32>
    %186 = arith.mulf %185, %30 : vector<8x128xf32>
    %c7_i32_53 = arith.constant 7 : i32
    %187 = tpu.dynamic_rotate %182 by %c7_i32_53 dim 1 : vector<8x128xf32>, i32 -> vector<8x128xf32>
    %188 = arith.mulf %187, %33 : vector<8x128xf32>
    %c1_i32_54 = arith.constant 1 : i32
    %189 = tpu.dynamic_rotate %182 by %c1_i32_54 dim 1 : vector<8x128xf32>, i32 -> vector<8x128xf32>
    %190 = arith.mulf %189, %36 : vector<8x128xf32>
    %c127_i32_55 = arith.constant 127 : i32
    %191 = tpu.dynamic_rotate %182 by %c127_i32_55 dim 1 : vector<8x128xf32>, i32 -> vector<8x128xf32>
    %192 = arith.mulf %191, %39 : vector<8x128xf32>
    %c121_i32_56 = arith.constant 121 : i32
    %193 = tpu.dynamic_rotate %182 by %c121_i32_56 dim 1 : vector<8x128xf32>, i32 -> vector<8x128xf32>
    %194 = arith.mulf %193, %42 : vector<8x128xf32>
    %c120_i32_57 = arith.constant 120 : i32
    %195 = tpu.dynamic_rotate %182 by %c120_i32_57 dim 1 : vector<8x128xf32>, i32 -> vector<8x128xf32>
    %196 = arith.mulf %195, %45 : vector<8x128xf32>
    %c119_i32_58 = arith.constant 119 : i32
    %197 = tpu.dynamic_rotate %182 by %c119_i32_58 dim 1 : vector<8x128xf32>, i32 -> vector<8x128xf32>
    %198 = arith.mulf %197, %48 : vector<8x128xf32>
    %199 = tpu.concatenate %184, %186, %188, %190, %182, %192, %194, %196, %198 in 0 : vector<8x128xf32>, vector<8x128xf32>, vector<8x128xf32>, vector<8x128xf32>, vector<8x128xf32>, vector<8x128xf32>, vector<8x128xf32>, vector<8x128xf32>, vector<8x128xf32> -> vector<72x128xf32>
    %cst_59 = arith.constant dense<0.000000e+00> : vector<16x128xf32>
    %200 = tpu.matmul %49, %199, %cst_59 {dimension_numbers = #tpu.dot_dimension_numbers<[1], [0], [0], [1], [0, 0, 1, 1], [], []>} : vector<16x72xf32>, vector<72x128xf32>, vector<16x128xf32> -> vector<16x128xf32>
    %201 = arith.addf %200, %55 : vector<16x128xf32>
    %202 = vector.extract_strided_slice %201 {offsets = [0, 0], sizes = [12, 128], strides = [1, 1]} : vector<16x128xf32> to vector<12x128xf32>
    %203 = arith.negf %202 : vector<12x128xf32>
    %204 = math.exp %203 : vector<12x128xf32>
    %cst_60 = arith.constant 1.000000e+00 : f32
    %205 = vector.broadcast %cst_60 : f32 to vector<12x128xf32>
    %206 = arith.addf %205, %204 : vector<12x128xf32>
    %207 = arith.divf %205, %206 : vector<12x128xf32>
    %208 = vector.extract_strided_slice %201 {offsets = [12, 0], sizes = [4, 128], strides = [1, 1]} : vector<16x128xf32> to vector<4x128xf32>
    %209 = math.tanh %208 : vector<4x128xf32>
    %210 = vector.extract_strided_slice %207 {offsets = [0, 0], sizes = [4, 128], strides = [1, 1]} : vector<12x128xf32> to vector<4x128xf32>
    %211 = vector.extract_strided_slice %207 {offsets = [4, 0], sizes = [4, 128], strides = [1, 1]} : vector<12x128xf32> to vector<4x128xf32>
    %212 = vector.extract_strided_slice %207 {offsets = [8, 0], sizes = [4, 128], strides = [1, 1]} : vector<12x128xf32> to vector<4x128xf32>
    %213 = arith.mulf %211, %177 : vector<4x128xf32>
    %214 = arith.mulf %210, %209 : vector<4x128xf32>
    %215 = arith.addf %213, %214 : vector<4x128xf32>
    %216 = math.tanh %215 : vector<4x128xf32>
    %217 = arith.mulf %212, %216 : vector<4x128xf32>
    %218 = tpu.concatenate %217, %64 in 0 : vector<4x128xf32>, vector<4x128xf32> -> vector<8x128xf32>
    %c9_i32_61 = arith.constant 9 : i32
    %219 = tpu.dynamic_rotate %218 by %c9_i32_61 dim 1 : vector<8x128xf32>, i32 -> vector<8x128xf32>
    %220 = arith.mulf %219, %27 : vector<8x128xf32>
    %c8_i32_62 = arith.constant 8 : i32
    %221 = tpu.dynamic_rotate %218 by %c8_i32_62 dim 1 : vector<8x128xf32>, i32 -> vector<8x128xf32>
    %222 = arith.mulf %221, %30 : vector<8x128xf32>
    %c7_i32_63 = arith.constant 7 : i32
    %223 = tpu.dynamic_rotate %218 by %c7_i32_63 dim 1 : vector<8x128xf32>, i32 -> vector<8x128xf32>
    %224 = arith.mulf %223, %33 : vector<8x128xf32>
    %c1_i32_64 = arith.constant 1 : i32
    %225 = tpu.dynamic_rotate %218 by %c1_i32_64 dim 1 : vector<8x128xf32>, i32 -> vector<8x128xf32>
    %226 = arith.mulf %225, %36 : vector<8x128xf32>
    %c127_i32_65 = arith.constant 127 : i32
    %227 = tpu.dynamic_rotate %218 by %c127_i32_65 dim 1 : vector<8x128xf32>, i32 -> vector<8x128xf32>
    %228 = arith.mulf %227, %39 : vector<8x128xf32>
    %c121_i32_66 = arith.constant 121 : i32
    %229 = tpu.dynamic_rotate %218 by %c121_i32_66 dim 1 : vector<8x128xf32>, i32 -> vector<8x128xf32>
    %230 = arith.mulf %229, %42 : vector<8x128xf32>
    %c120_i32_67 = arith.constant 120 : i32
    %231 = tpu.dynamic_rotate %218 by %c120_i32_67 dim 1 : vector<8x128xf32>, i32 -> vector<8x128xf32>
    %232 = arith.mulf %231, %45 : vector<8x128xf32>
    %c119_i32_68 = arith.constant 119 : i32
    %233 = tpu.dynamic_rotate %218 by %c119_i32_68 dim 1 : vector<8x128xf32>, i32 -> vector<8x128xf32>
    %234 = arith.mulf %233, %48 : vector<8x128xf32>
    %235 = tpu.concatenate %220, %222, %224, %226, %218, %228, %230, %232, %234 in 0 : vector<8x128xf32>, vector<8x128xf32>, vector<8x128xf32>, vector<8x128xf32>, vector<8x128xf32>, vector<8x128xf32>, vector<8x128xf32>, vector<8x128xf32>, vector<8x128xf32> -> vector<72x128xf32>
    %cst_69 = arith.constant dense<0.000000e+00> : vector<16x128xf32>
    %236 = tpu.matmul %50, %235, %cst_69 {dimension_numbers = #tpu.dot_dimension_numbers<[1], [0], [0], [1], [0, 0, 1, 1], [], []>} : vector<16x72xf32>, vector<72x128xf32>, vector<16x128xf32> -> vector<16x128xf32>
    %237 = arith.addf %236, %58 : vector<16x128xf32>
    %238 = vector.extract_strided_slice %237 {offsets = [0, 0], sizes = [12, 128], strides = [1, 1]} : vector<16x128xf32> to vector<12x128xf32>
    %239 = arith.negf %238 : vector<12x128xf32>
    %240 = math.exp %239 : vector<12x128xf32>
    %cst_70 = arith.constant 1.000000e+00 : f32
    %241 = vector.broadcast %cst_70 : f32 to vector<12x128xf32>
    %242 = arith.addf %241, %240 : vector<12x128xf32>
    %243 = arith.divf %241, %242 : vector<12x128xf32>
    %244 = vector.extract_strided_slice %237 {offsets = [12, 0], sizes = [4, 128], strides = [1, 1]} : vector<16x128xf32> to vector<4x128xf32>
    %245 = math.tanh %244 : vector<4x128xf32>
    %246 = vector.extract_strided_slice %243 {offsets = [0, 0], sizes = [4, 128], strides = [1, 1]} : vector<12x128xf32> to vector<4x128xf32>
    %247 = vector.extract_strided_slice %243 {offsets = [4, 0], sizes = [4, 128], strides = [1, 1]} : vector<12x128xf32> to vector<4x128xf32>
    %248 = vector.extract_strided_slice %243 {offsets = [8, 0], sizes = [4, 128], strides = [1, 1]} : vector<12x128xf32> to vector<4x128xf32>
    %249 = arith.mulf %247, %65 : vector<4x128xf32>
    %250 = arith.mulf %246, %245 : vector<4x128xf32>
    %251 = arith.addf %249, %250 : vector<4x128xf32>
    %252 = math.tanh %251 : vector<4x128xf32>
    %253 = arith.mulf %248, %252 : vector<4x128xf32>
    %c9_i32_71 = arith.constant 9 : i32
    %254 = tpu.dynamic_rotate %253 by %c9_i32_71 dim 1 : vector<4x128xf32>, i32 -> vector<4x128xf32>
    %255 = arith.mulf %254, %3 : vector<4x128xf32>
    %256 = vector.extract_strided_slice %51 {offsets = [0, 0, 0], sizes = [1, 16, 4], strides = [1, 1, 1]} : vector<9x16x4xf32> to vector<1x16x4xf32>
    %257 = vector.shape_cast %256 : vector<1x16x4xf32> to vector<16x4xf32>
    %cst_72 = arith.constant dense<0.000000e+00> : vector<16x128xf32>
    %258 = tpu.matmul %257, %255, %cst_72 {dimension_numbers = #tpu.dot_dimension_numbers<[1], [0], [0], [1], [0, 0, 1, 1], [], []>} : vector<16x4xf32>, vector<4x128xf32>, vector<16x128xf32> -> vector<16x128xf32>
    %259 = arith.addf %58, %258 : vector<16x128xf32>
    %c8_i32_73 = arith.constant 8 : i32
    %260 = tpu.dynamic_rotate %253 by %c8_i32_73 dim 1 : vector<4x128xf32>, i32 -> vector<4x128xf32>
    %261 = arith.mulf %260, %6 : vector<4x128xf32>
    %262 = vector.extract_strided_slice %51 {offsets = [1, 0, 0], sizes = [1, 16, 4], strides = [1, 1, 1]} : vector<9x16x4xf32> to vector<1x16x4xf32>
    %263 = vector.shape_cast %262 : vector<1x16x4xf32> to vector<16x4xf32>
    %cst_74 = arith.constant dense<0.000000e+00> : vector<16x128xf32>
    %264 = tpu.matmul %263, %261, %cst_74 {dimension_numbers = #tpu.dot_dimension_numbers<[1], [0], [0], [1], [0, 0, 1, 1], [], []>} : vector<16x4xf32>, vector<4x128xf32>, vector<16x128xf32> -> vector<16x128xf32>
    %265 = arith.addf %259, %264 : vector<16x128xf32>
    %c7_i32_75 = arith.constant 7 : i32
    %266 = tpu.dynamic_rotate %253 by %c7_i32_75 dim 1 : vector<4x128xf32>, i32 -> vector<4x128xf32>
    %267 = arith.mulf %266, %9 : vector<4x128xf32>
    %268 = vector.extract_strided_slice %51 {offsets = [2, 0, 0], sizes = [1, 16, 4], strides = [1, 1, 1]} : vector<9x16x4xf32> to vector<1x16x4xf32>
    %269 = vector.shape_cast %268 : vector<1x16x4xf32> to vector<16x4xf32>
    %cst_76 = arith.constant dense<0.000000e+00> : vector<16x128xf32>
    %270 = tpu.matmul %269, %267, %cst_76 {dimension_numbers = #tpu.dot_dimension_numbers<[1], [0], [0], [1], [0, 0, 1, 1], [], []>} : vector<16x4xf32>, vector<4x128xf32>, vector<16x128xf32> -> vector<16x128xf32>
    %271 = arith.addf %265, %270 : vector<16x128xf32>
    %c1_i32_77 = arith.constant 1 : i32
    %272 = tpu.dynamic_rotate %253 by %c1_i32_77 dim 1 : vector<4x128xf32>, i32 -> vector<4x128xf32>
    %273 = arith.mulf %272, %12 : vector<4x128xf32>
    %274 = vector.extract_strided_slice %51 {offsets = [3, 0, 0], sizes = [1, 16, 4], strides = [1, 1, 1]} : vector<9x16x4xf32> to vector<1x16x4xf32>
    %275 = vector.shape_cast %274 : vector<1x16x4xf32> to vector<16x4xf32>
    %cst_78 = arith.constant dense<0.000000e+00> : vector<16x128xf32>
    %276 = tpu.matmul %275, %273, %cst_78 {dimension_numbers = #tpu.dot_dimension_numbers<[1], [0], [0], [1], [0, 0, 1, 1], [], []>} : vector<16x4xf32>, vector<4x128xf32>, vector<16x128xf32> -> vector<16x128xf32>
    %277 = arith.addf %271, %276 : vector<16x128xf32>
    %278 = vector.extract_strided_slice %51 {offsets = [4, 0, 0], sizes = [1, 16, 4], strides = [1, 1, 1]} : vector<9x16x4xf32> to vector<1x16x4xf32>
    %279 = vector.shape_cast %278 : vector<1x16x4xf32> to vector<16x4xf32>
    %cst_79 = arith.constant dense<0.000000e+00> : vector<16x128xf32>
    %280 = tpu.matmul %279, %253, %cst_79 {dimension_numbers = #tpu.dot_dimension_numbers<[1], [0], [0], [1], [0, 0, 1, 1], [], []>} : vector<16x4xf32>, vector<4x128xf32>, vector<16x128xf32> -> vector<16x128xf32>
    %281 = arith.addf %277, %280 : vector<16x128xf32>
    %c127_i32_80 = arith.constant 127 : i32
    %282 = tpu.dynamic_rotate %253 by %c127_i32_80 dim 1 : vector<4x128xf32>, i32 -> vector<4x128xf32>
    %283 = arith.mulf %282, %15 : vector<4x128xf32>
    %284 = vector.extract_strided_slice %51 {offsets = [5, 0, 0], sizes = [1, 16, 4], strides = [1, 1, 1]} : vector<9x16x4xf32> to vector<1x16x4xf32>
    %285 = vector.shape_cast %284 : vector<1x16x4xf32> to vector<16x4xf32>
    %cst_81 = arith.constant dense<0.000000e+00> : vector<16x128xf32>
    %286 = tpu.matmul %285, %283, %cst_81 {dimension_numbers = #tpu.dot_dimension_numbers<[1], [0], [0], [1], [0, 0, 1, 1], [], []>} : vector<16x4xf32>, vector<4x128xf32>, vector<16x128xf32> -> vector<16x128xf32>
    %287 = arith.addf %281, %286 : vector<16x128xf32>
    %c121_i32_82 = arith.constant 121 : i32
    %288 = tpu.dynamic_rotate %253 by %c121_i32_82 dim 1 : vector<4x128xf32>, i32 -> vector<4x128xf32>
    %289 = arith.mulf %288, %18 : vector<4x128xf32>
    %290 = vector.extract_strided_slice %51 {offsets = [6, 0, 0], sizes = [1, 16, 4], strides = [1, 1, 1]} : vector<9x16x4xf32> to vector<1x16x4xf32>
    %291 = vector.shape_cast %290 : vector<1x16x4xf32> to vector<16x4xf32>
    %cst_83 = arith.constant dense<0.000000e+00> : vector<16x128xf32>
    %292 = tpu.matmul %291, %289, %cst_83 {dimension_numbers = #tpu.dot_dimension_numbers<[1], [0], [0], [1], [0, 0, 1, 1], [], []>} : vector<16x4xf32>, vector<4x128xf32>, vector<16x128xf32> -> vector<16x128xf32>
    %293 = arith.addf %287, %292 : vector<16x128xf32>
    %c120_i32_84 = arith.constant 120 : i32
    %294 = tpu.dynamic_rotate %253 by %c120_i32_84 dim 1 : vector<4x128xf32>, i32 -> vector<4x128xf32>
    %295 = arith.mulf %294, %21 : vector<4x128xf32>
    %296 = vector.extract_strided_slice %51 {offsets = [7, 0, 0], sizes = [1, 16, 4], strides = [1, 1, 1]} : vector<9x16x4xf32> to vector<1x16x4xf32>
    %297 = vector.shape_cast %296 : vector<1x16x4xf32> to vector<16x4xf32>
    %cst_85 = arith.constant dense<0.000000e+00> : vector<16x128xf32>
    %298 = tpu.matmul %297, %295, %cst_85 {dimension_numbers = #tpu.dot_dimension_numbers<[1], [0], [0], [1], [0, 0, 1, 1], [], []>} : vector<16x4xf32>, vector<4x128xf32>, vector<16x128xf32> -> vector<16x128xf32>
    %299 = arith.addf %293, %298 : vector<16x128xf32>
    %c119_i32_86 = arith.constant 119 : i32
    %300 = tpu.dynamic_rotate %253 by %c119_i32_86 dim 1 : vector<4x128xf32>, i32 -> vector<4x128xf32>
    %301 = arith.mulf %300, %24 : vector<4x128xf32>
    %302 = vector.extract_strided_slice %51 {offsets = [8, 0, 0], sizes = [1, 16, 4], strides = [1, 1, 1]} : vector<9x16x4xf32> to vector<1x16x4xf32>
    %303 = vector.shape_cast %302 : vector<1x16x4xf32> to vector<16x4xf32>
    %cst_87 = arith.constant dense<0.000000e+00> : vector<16x128xf32>
    %304 = tpu.matmul %303, %301, %cst_87 {dimension_numbers = #tpu.dot_dimension_numbers<[1], [0], [0], [1], [0, 0, 1, 1], [], []>} : vector<16x4xf32>, vector<4x128xf32>, vector<16x128xf32> -> vector<16x128xf32>
    %305 = arith.addf %299, %304 : vector<16x128xf32>
    %306 = vector.extract_strided_slice %305 {offsets = [0, 0], sizes = [12, 128], strides = [1, 1]} : vector<16x128xf32> to vector<12x128xf32>
    %307 = arith.negf %306 : vector<12x128xf32>
    %308 = math.exp %307 : vector<12x128xf32>
    %cst_88 = arith.constant 1.000000e+00 : f32
    %309 = vector.broadcast %cst_88 : f32 to vector<12x128xf32>
    %310 = arith.addf %309, %308 : vector<12x128xf32>
    %311 = arith.divf %309, %310 : vector<12x128xf32>
    %312 = vector.extract_strided_slice %305 {offsets = [12, 0], sizes = [4, 128], strides = [1, 1]} : vector<16x128xf32> to vector<4x128xf32>
    %313 = math.tanh %312 : vector<4x128xf32>
    %314 = vector.extract_strided_slice %311 {offsets = [0, 0], sizes = [4, 128], strides = [1, 1]} : vector<12x128xf32> to vector<4x128xf32>
    %315 = vector.extract_strided_slice %311 {offsets = [4, 0], sizes = [4, 128], strides = [1, 1]} : vector<12x128xf32> to vector<4x128xf32>
    %316 = vector.extract_strided_slice %311 {offsets = [8, 0], sizes = [4, 128], strides = [1, 1]} : vector<12x128xf32> to vector<4x128xf32>
    %317 = arith.mulf %315, %251 : vector<4x128xf32>
    %318 = arith.mulf %314, %313 : vector<4x128xf32>
    %319 = arith.addf %317, %318 : vector<4x128xf32>
    %320 = math.tanh %319 : vector<4x128xf32>
    %321 = arith.mulf %316, %320 : vector<4x128xf32>
    %c9_i32_89 = arith.constant 9 : i32
    %322 = tpu.dynamic_rotate %321 by %c9_i32_89 dim 1 : vector<4x128xf32>, i32 -> vector<4x128xf32>
    %323 = arith.mulf %322, %3 : vector<4x128xf32>
    %324 = vector.extract_strided_slice %51 {offsets = [0, 0, 0], sizes = [1, 16, 4], strides = [1, 1, 1]} : vector<9x16x4xf32> to vector<1x16x4xf32>
    %325 = vector.shape_cast %324 : vector<1x16x4xf32> to vector<16x4xf32>
    %cst_90 = arith.constant dense<0.000000e+00> : vector<16x128xf32>
    %326 = tpu.matmul %325, %323, %cst_90 {dimension_numbers = #tpu.dot_dimension_numbers<[1], [0], [0], [1], [0, 0, 1, 1], [], []>} : vector<16x4xf32>, vector<4x128xf32>, vector<16x128xf32> -> vector<16x128xf32>
    %327 = arith.addf %58, %326 : vector<16x128xf32>
    %c8_i32_91 = arith.constant 8 : i32
    %328 = tpu.dynamic_rotate %321 by %c8_i32_91 dim 1 : vector<4x128xf32>, i32 -> vector<4x128xf32>
    %329 = arith.mulf %328, %6 : vector<4x128xf32>
    %330 = vector.extract_strided_slice %51 {offsets = [1, 0, 0], sizes = [1, 16, 4], strides = [1, 1, 1]} : vector<9x16x4xf32> to vector<1x16x4xf32>
    %331 = vector.shape_cast %330 : vector<1x16x4xf32> to vector<16x4xf32>
    %cst_92 = arith.constant dense<0.000000e+00> : vector<16x128xf32>
    %332 = tpu.matmul %331, %329, %cst_92 {dimension_numbers = #tpu.dot_dimension_numbers<[1], [0], [0], [1], [0, 0, 1, 1], [], []>} : vector<16x4xf32>, vector<4x128xf32>, vector<16x128xf32> -> vector<16x128xf32>
    %333 = arith.addf %327, %332 : vector<16x128xf32>
    %c7_i32_93 = arith.constant 7 : i32
    %334 = tpu.dynamic_rotate %321 by %c7_i32_93 dim 1 : vector<4x128xf32>, i32 -> vector<4x128xf32>
    %335 = arith.mulf %334, %9 : vector<4x128xf32>
    %336 = vector.extract_strided_slice %51 {offsets = [2, 0, 0], sizes = [1, 16, 4], strides = [1, 1, 1]} : vector<9x16x4xf32> to vector<1x16x4xf32>
    %337 = vector.shape_cast %336 : vector<1x16x4xf32> to vector<16x4xf32>
    %cst_94 = arith.constant dense<0.000000e+00> : vector<16x128xf32>
    %338 = tpu.matmul %337, %335, %cst_94 {dimension_numbers = #tpu.dot_dimension_numbers<[1], [0], [0], [1], [0, 0, 1, 1], [], []>} : vector<16x4xf32>, vector<4x128xf32>, vector<16x128xf32> -> vector<16x128xf32>
    %339 = arith.addf %333, %338 : vector<16x128xf32>
    %c1_i32_95 = arith.constant 1 : i32
    %340 = tpu.dynamic_rotate %321 by %c1_i32_95 dim 1 : vector<4x128xf32>, i32 -> vector<4x128xf32>
    %341 = arith.mulf %340, %12 : vector<4x128xf32>
    %342 = vector.extract_strided_slice %51 {offsets = [3, 0, 0], sizes = [1, 16, 4], strides = [1, 1, 1]} : vector<9x16x4xf32> to vector<1x16x4xf32>
    %343 = vector.shape_cast %342 : vector<1x16x4xf32> to vector<16x4xf32>
    %cst_96 = arith.constant dense<0.000000e+00> : vector<16x128xf32>
    %344 = tpu.matmul %343, %341, %cst_96 {dimension_numbers = #tpu.dot_dimension_numbers<[1], [0], [0], [1], [0, 0, 1, 1], [], []>} : vector<16x4xf32>, vector<4x128xf32>, vector<16x128xf32> -> vector<16x128xf32>
    %345 = arith.addf %339, %344 : vector<16x128xf32>
    %346 = vector.extract_strided_slice %51 {offsets = [4, 0, 0], sizes = [1, 16, 4], strides = [1, 1, 1]} : vector<9x16x4xf32> to vector<1x16x4xf32>
    %347 = vector.shape_cast %346 : vector<1x16x4xf32> to vector<16x4xf32>
    %cst_97 = arith.constant dense<0.000000e+00> : vector<16x128xf32>
    %348 = tpu.matmul %347, %321, %cst_97 {dimension_numbers = #tpu.dot_dimension_numbers<[1], [0], [0], [1], [0, 0, 1, 1], [], []>} : vector<16x4xf32>, vector<4x128xf32>, vector<16x128xf32> -> vector<16x128xf32>
    %349 = arith.addf %345, %348 : vector<16x128xf32>
    %c127_i32_98 = arith.constant 127 : i32
    %350 = tpu.dynamic_rotate %321 by %c127_i32_98 dim 1 : vector<4x128xf32>, i32 -> vector<4x128xf32>
    %351 = arith.mulf %350, %15 : vector<4x128xf32>
    %352 = vector.extract_strided_slice %51 {offsets = [5, 0, 0], sizes = [1, 16, 4], strides = [1, 1, 1]} : vector<9x16x4xf32> to vector<1x16x4xf32>
    %353 = vector.shape_cast %352 : vector<1x16x4xf32> to vector<16x4xf32>
    %cst_99 = arith.constant dense<0.000000e+00> : vector<16x128xf32>
    %354 = tpu.matmul %353, %351, %cst_99 {dimension_numbers = #tpu.dot_dimension_numbers<[1], [0], [0], [1], [0, 0, 1, 1], [], []>} : vector<16x4xf32>, vector<4x128xf32>, vector<16x128xf32> -> vector<16x128xf32>
    %355 = arith.addf %349, %354 : vector<16x128xf32>
    %c121_i32_100 = arith.constant 121 : i32
    %356 = tpu.dynamic_rotate %321 by %c121_i32_100 dim 1 : vector<4x128xf32>, i32 -> vector<4x128xf32>
    %357 = arith.mulf %356, %18 : vector<4x128xf32>
    %358 = vector.extract_strided_slice %51 {offsets = [6, 0, 0], sizes = [1, 16, 4], strides = [1, 1, 1]} : vector<9x16x4xf32> to vector<1x16x4xf32>
    %359 = vector.shape_cast %358 : vector<1x16x4xf32> to vector<16x4xf32>
    %cst_101 = arith.constant dense<0.000000e+00> : vector<16x128xf32>
    %360 = tpu.matmul %359, %357, %cst_101 {dimension_numbers = #tpu.dot_dimension_numbers<[1], [0], [0], [1], [0, 0, 1, 1], [], []>} : vector<16x4xf32>, vector<4x128xf32>, vector<16x128xf32> -> vector<16x128xf32>
    %361 = arith.addf %355, %360 : vector<16x128xf32>
    %c120_i32_102 = arith.constant 120 : i32
    %362 = tpu.dynamic_rotate %321 by %c120_i32_102 dim 1 : vector<4x128xf32>, i32 -> vector<4x128xf32>
    %363 = arith.mulf %362, %21 : vector<4x128xf32>
    %364 = vector.extract_strided_slice %51 {offsets = [7, 0, 0], sizes = [1, 16, 4], strides = [1, 1, 1]} : vector<9x16x4xf32> to vector<1x16x4xf32>
    %365 = vector.shape_cast %364 : vector<1x16x4xf32> to vector<16x4xf32>
    %cst_103 = arith.constant dense<0.000000e+00> : vector<16x128xf32>
    %366 = tpu.matmul %365, %363, %cst_103 {dimension_numbers = #tpu.dot_dimension_numbers<[1], [0], [0], [1], [0, 0, 1, 1], [], []>} : vector<16x4xf32>, vector<4x128xf32>, vector<16x128xf32> -> vector<16x128xf32>
    %367 = arith.addf %361, %366 : vector<16x128xf32>
    %c119_i32_104 = arith.constant 119 : i32
    %368 = tpu.dynamic_rotate %321 by %c119_i32_104 dim 1 : vector<4x128xf32>, i32 -> vector<4x128xf32>
    %369 = arith.mulf %368, %24 : vector<4x128xf32>
    %370 = vector.extract_strided_slice %51 {offsets = [8, 0, 0], sizes = [1, 16, 4], strides = [1, 1, 1]} : vector<9x16x4xf32> to vector<1x16x4xf32>
    %371 = vector.shape_cast %370 : vector<1x16x4xf32> to vector<16x4xf32>
    %cst_105 = arith.constant dense<0.000000e+00> : vector<16x128xf32>
    %372 = tpu.matmul %371, %369, %cst_105 {dimension_numbers = #tpu.dot_dimension_numbers<[1], [0], [0], [1], [0, 0, 1, 1], [], []>} : vector<16x4xf32>, vector<4x128xf32>, vector<16x128xf32> -> vector<16x128xf32>
    %373 = arith.addf %367, %372 : vector<16x128xf32>
    %374 = vector.extract_strided_slice %373 {offsets = [0, 0], sizes = [12, 128], strides = [1, 1]} : vector<16x128xf32> to vector<12x128xf32>
    %375 = arith.negf %374 : vector<12x128xf32>
    %376 = math.exp %375 : vector<12x128xf32>
    %cst_106 = arith.constant 1.000000e+00 : f32
    %377 = vector.broadcast %cst_106 : f32 to vector<12x128xf32>
    %378 = arith.addf %377, %376 : vector<12x128xf32>
    %379 = arith.divf %377, %378 : vector<12x128xf32>
    %380 = vector.extract_strided_slice %373 {offsets = [12, 0], sizes = [4, 128], strides = [1, 1]} : vector<16x128xf32> to vector<4x128xf32>
    %381 = math.tanh %380 : vector<4x128xf32>
    %382 = vector.extract_strided_slice %379 {offsets = [0, 0], sizes = [4, 128], strides = [1, 1]} : vector<12x128xf32> to vector<4x128xf32>
    %383 = vector.extract_strided_slice %379 {offsets = [4, 0], sizes = [4, 128], strides = [1, 1]} : vector<12x128xf32> to vector<4x128xf32>
    %384 = vector.extract_strided_slice %379 {offsets = [8, 0], sizes = [4, 128], strides = [1, 1]} : vector<12x128xf32> to vector<4x128xf32>
    %385 = arith.mulf %383, %319 : vector<4x128xf32>
    %386 = arith.mulf %382, %381 : vector<4x128xf32>
    %387 = arith.addf %385, %386 : vector<4x128xf32>
    %388 = math.tanh %387 : vector<4x128xf32>
    %389 = arith.mulf %384, %388 : vector<4x128xf32>
    %c9_i32_107 = arith.constant 9 : i32
    %390 = tpu.dynamic_rotate %389 by %c9_i32_107 dim 1 : vector<4x128xf32>, i32 -> vector<4x128xf32>
    %391 = arith.mulf %390, %3 : vector<4x128xf32>
    %392 = vector.extract_strided_slice %52 {offsets = [0, 0, 0], sizes = [1, 1, 4], strides = [1, 1, 1]} : vector<9x1x4xf32> to vector<1x1x4xf32>
    %393 = vector.shape_cast %392 : vector<1x1x4xf32> to vector<1x4xf32>
    %cst_108 = arith.constant dense<0.000000e+00> : vector<1x128xf32>
    %394 = tpu.matmul %393, %391, %cst_108 {dimension_numbers = #tpu.dot_dimension_numbers<[1], [0], [0], [1], [0, 0, 1, 1], [], []>} : vector<1x4xf32>, vector<4x128xf32>, vector<1x128xf32> -> vector<1x128xf32>
    %395 = arith.addf %61, %394 : vector<1x128xf32>
    %c8_i32_109 = arith.constant 8 : i32
    %396 = tpu.dynamic_rotate %389 by %c8_i32_109 dim 1 : vector<4x128xf32>, i32 -> vector<4x128xf32>
    %397 = arith.mulf %396, %6 : vector<4x128xf32>
    %398 = vector.extract_strided_slice %52 {offsets = [1, 0, 0], sizes = [1, 1, 4], strides = [1, 1, 1]} : vector<9x1x4xf32> to vector<1x1x4xf32>
    %399 = vector.shape_cast %398 : vector<1x1x4xf32> to vector<1x4xf32>
    %cst_110 = arith.constant dense<0.000000e+00> : vector<1x128xf32>
    %400 = tpu.matmul %399, %397, %cst_110 {dimension_numbers = #tpu.dot_dimension_numbers<[1], [0], [0], [1], [0, 0, 1, 1], [], []>} : vector<1x4xf32>, vector<4x128xf32>, vector<1x128xf32> -> vector<1x128xf32>
    %401 = arith.addf %395, %400 : vector<1x128xf32>
    %c7_i32_111 = arith.constant 7 : i32
    %402 = tpu.dynamic_rotate %389 by %c7_i32_111 dim 1 : vector<4x128xf32>, i32 -> vector<4x128xf32>
    %403 = arith.mulf %402, %9 : vector<4x128xf32>
    %404 = vector.extract_strided_slice %52 {offsets = [2, 0, 0], sizes = [1, 1, 4], strides = [1, 1, 1]} : vector<9x1x4xf32> to vector<1x1x4xf32>
    %405 = vector.shape_cast %404 : vector<1x1x4xf32> to vector<1x4xf32>
    %cst_112 = arith.constant dense<0.000000e+00> : vector<1x128xf32>
    %406 = tpu.matmul %405, %403, %cst_112 {dimension_numbers = #tpu.dot_dimension_numbers<[1], [0], [0], [1], [0, 0, 1, 1], [], []>} : vector<1x4xf32>, vector<4x128xf32>, vector<1x128xf32> -> vector<1x128xf32>
    %407 = arith.addf %401, %406 : vector<1x128xf32>
    %c1_i32_113 = arith.constant 1 : i32
    %408 = tpu.dynamic_rotate %389 by %c1_i32_113 dim 1 : vector<4x128xf32>, i32 -> vector<4x128xf32>
    %409 = arith.mulf %408, %12 : vector<4x128xf32>
    %410 = vector.extract_strided_slice %52 {offsets = [3, 0, 0], sizes = [1, 1, 4], strides = [1, 1, 1]} : vector<9x1x4xf32> to vector<1x1x4xf32>
    %411 = vector.shape_cast %410 : vector<1x1x4xf32> to vector<1x4xf32>
    %cst_114 = arith.constant dense<0.000000e+00> : vector<1x128xf32>
    %412 = tpu.matmul %411, %409, %cst_114 {dimension_numbers = #tpu.dot_dimension_numbers<[1], [0], [0], [1], [0, 0, 1, 1], [], []>} : vector<1x4xf32>, vector<4x128xf32>, vector<1x128xf32> -> vector<1x128xf32>
    %413 = arith.addf %407, %412 : vector<1x128xf32>
    %414 = vector.extract_strided_slice %52 {offsets = [4, 0, 0], sizes = [1, 1, 4], strides = [1, 1, 1]} : vector<9x1x4xf32> to vector<1x1x4xf32>
    %415 = vector.shape_cast %414 : vector<1x1x4xf32> to vector<1x4xf32>
    %cst_115 = arith.constant dense<0.000000e+00> : vector<1x128xf32>
    %416 = tpu.matmul %415, %389, %cst_115 {dimension_numbers = #tpu.dot_dimension_numbers<[1], [0], [0], [1], [0, 0, 1, 1], [], []>} : vector<1x4xf32>, vector<4x128xf32>, vector<1x128xf32> -> vector<1x128xf32>
    %417 = arith.addf %413, %416 : vector<1x128xf32>
    %c127_i32_116 = arith.constant 127 : i32
    %418 = tpu.dynamic_rotate %389 by %c127_i32_116 dim 1 : vector<4x128xf32>, i32 -> vector<4x128xf32>
    %419 = arith.mulf %418, %15 : vector<4x128xf32>
    %420 = vector.extract_strided_slice %52 {offsets = [5, 0, 0], sizes = [1, 1, 4], strides = [1, 1, 1]} : vector<9x1x4xf32> to vector<1x1x4xf32>
    %421 = vector.shape_cast %420 : vector<1x1x4xf32> to vector<1x4xf32>
    %cst_117 = arith.constant dense<0.000000e+00> : vector<1x128xf32>
    %422 = tpu.matmul %421, %419, %cst_117 {dimension_numbers = #tpu.dot_dimension_numbers<[1], [0], [0], [1], [0, 0, 1, 1], [], []>} : vector<1x4xf32>, vector<4x128xf32>, vector<1x128xf32> -> vector<1x128xf32>
    %423 = arith.addf %417, %422 : vector<1x128xf32>
    %c121_i32_118 = arith.constant 121 : i32
    %424 = tpu.dynamic_rotate %389 by %c121_i32_118 dim 1 : vector<4x128xf32>, i32 -> vector<4x128xf32>
    %425 = arith.mulf %424, %18 : vector<4x128xf32>
    %426 = vector.extract_strided_slice %52 {offsets = [6, 0, 0], sizes = [1, 1, 4], strides = [1, 1, 1]} : vector<9x1x4xf32> to vector<1x1x4xf32>
    %427 = vector.shape_cast %426 : vector<1x1x4xf32> to vector<1x4xf32>
    %cst_119 = arith.constant dense<0.000000e+00> : vector<1x128xf32>
    %428 = tpu.matmul %427, %425, %cst_119 {dimension_numbers = #tpu.dot_dimension_numbers<[1], [0], [0], [1], [0, 0, 1, 1], [], []>} : vector<1x4xf32>, vector<4x128xf32>, vector<1x128xf32> -> vector<1x128xf32>
    %429 = arith.addf %423, %428 : vector<1x128xf32>
    %c120_i32_120 = arith.constant 120 : i32
    %430 = tpu.dynamic_rotate %389 by %c120_i32_120 dim 1 : vector<4x128xf32>, i32 -> vector<4x128xf32>
    %431 = arith.mulf %430, %21 : vector<4x128xf32>
    %432 = vector.extract_strided_slice %52 {offsets = [7, 0, 0], sizes = [1, 1, 4], strides = [1, 1, 1]} : vector<9x1x4xf32> to vector<1x1x4xf32>
    %433 = vector.shape_cast %432 : vector<1x1x4xf32> to vector<1x4xf32>
    %cst_121 = arith.constant dense<0.000000e+00> : vector<1x128xf32>
    %434 = tpu.matmul %433, %431, %cst_121 {dimension_numbers = #tpu.dot_dimension_numbers<[1], [0], [0], [1], [0, 0, 1, 1], [], []>} : vector<1x4xf32>, vector<4x128xf32>, vector<1x128xf32> -> vector<1x128xf32>
    %435 = arith.addf %429, %434 : vector<1x128xf32>
    %c119_i32_122 = arith.constant 119 : i32
    %436 = tpu.dynamic_rotate %389 by %c119_i32_122 dim 1 : vector<4x128xf32>, i32 -> vector<4x128xf32>
    %437 = arith.mulf %436, %24 : vector<4x128xf32>
    %438 = vector.extract_strided_slice %52 {offsets = [8, 0, 0], sizes = [1, 1, 4], strides = [1, 1, 1]} : vector<9x1x4xf32> to vector<1x1x4xf32>
    %439 = vector.shape_cast %438 : vector<1x1x4xf32> to vector<1x4xf32>
    %cst_123 = arith.constant dense<0.000000e+00> : vector<1x128xf32>
    %440 = tpu.matmul %439, %437, %cst_123 {dimension_numbers = #tpu.dot_dimension_numbers<[1], [0], [0], [1], [0, 0, 1, 1], [], []>} : vector<1x4xf32>, vector<4x128xf32>, vector<1x128xf32> -> vector<1x128xf32>
    %441 = arith.addf %435, %440 : vector<1x128xf32>
    %c0_124 = arith.constant 0 : index
    %c0_125 = arith.constant 0 : index
    %442 = vector.load %arg9[%c0_124, %c0_125] : memref<1x128xf32, #tpu.memory_space<vmem>>, vector<1x128xf32>
    tpu.vector_store %arg9[%c0_124, %c0_125], %441 {strides = array<i32>} : memref<1x128xf32, #tpu.memory_space<vmem>>, vector<1x128xf32>,
    return
  }
}

</mosaic_0001>

<bundles_post_ra>
// kernel: squeeze.1
= control target key start
LH: loop header
LB: loop body
LE: loop exit
PB: predicated region body
PF: predicated region fallthrough
CT: control target
= control target key end

     0   :  { %s365_s10 = smov 126   ;;  %s366_s11 = smov 124   ;;  %vm3_vm0 = vcmask 15360   ;;  %s650_s0 = inlined_call_operand.vmem [shape: f32[2,1,1,16,16], index: 0, kind: input, shape index: {}]   ;;  %s651_s1 = inlined_call_operand.vmem [shape: f32[2,8,2,8,2], index: 1, kind: output, shape index: {}]  }
   0x1   :  { %v27_v0 = vld [vmem:[%s650_s0] sm:$0xff]   ;;  %v286_v1 = vld [vmem:[%s650_s0 + $0x10] sm:$0xff]   ;;  %v283_v2 = vld [vmem:[%s650_s0 + $0x8] sm:$0xff]   ;;  %s368_s16 = smov 120   ;;  %s369_s17 = smov 118  }
   0x2   :  { %28 = vrot.lane.b32.xlu0 %v27_v0, %s365_s10  ;;  %46 = vrot.lane.b32.xlu1 %v286_v1, %s365_s10  ;;  %v289_v3 = vld [vmem:[%s650_s0 + $0x18] sm:$0xff]   ;;  %s367_s0 = smov 122   ;;  %4 = vst.msk [vmem:[%s651_s1] ss:$8 sm:$0xf] %vm3_vm0, %v27_v0   ;;  %s370_s5 = smov 116  }
   0x3   :  { %63 = vrot.lane.b32.xlu2 %v27_v0, %s366_s11  ;;  %5 = vst.msk [vmem:[%s651_s1] ss:$8 sm:$0xf0] %vm3_vm0, %v27_v0   ;;  %s371_s6 = smov 114  }
   0x4   :  { %273 = vst.msk [vmem:[%s651_s1 + $0x40] ss:$8 sm:$0xf] %vm3_vm0, %v283_v2  }
   0x5   :  { %274 = vst.msk [vmem:[%s651_s1 + $0x40] ss:$8 sm:$0xf0] %vm3_vm0, %v283_v2  }
   0x6   :  { %276 = vst.msk [vmem:[%s651_s1 + $0x80] ss:$8 sm:$0xf] %vm3_vm0, %v286_v1  }
   0x7   :  { %277 = vst.msk [vmem:[%s651_s1 + $0x80] ss:$8 sm:$0xf0] %vm3_vm0, %v286_v1  }
   0x8   :  { %279 = vst.msk [vmem:[%s651_s1 + $0xc0] ss:$8 sm:$0xf] %vm3_vm0, %v289_v3  }
   0x9   :  { %280 = vst.msk [vmem:[%s651_s1 + $0xc0] ss:$8 sm:$0xf0] %vm3_vm0, %v289_v3  }
   0xa   :  { %37 = vrot.lane.b32.xlu0 %v283_v2, %s365_s10  ;;  %55 = vrot.lane.b32.xlu1 %v289_v3, %s365_s10 }
   0xb   :  { %72 = vrot.lane.b32.xlu2 %v283_v2, %s366_s11 }
  0x12   :  { %81 = vrot.lane.b32.xlu0 %v286_v1, %s366_s11  ;;  %90 = vrot.lane.b32.xlu1 %v289_v3, %s366_s11 }
  0x13   :  { %98 = vrot.lane.b32.xlu2 %v27_v0, %s367_s0 }
  0x1a   :  { %107 = vrot.lane.b32.xlu0 %v283_v2, %s367_s0  ;;  %116 = vrot.lane.b32.xlu1 %v286_v1, %s367_s0 }
  0x1b   :  { %125 = vrot.lane.b32.xlu2 %v289_v3, %s367_s0 }
  0x22   :  { %133 = vrot.lane.b32.xlu0 %v27_v0, %s368_s16  ;;  %142 = vrot.lane.b32.xlu1 %v283_v2, %s368_s16 }
  0x23   :  { %151 = vrot.lane.b32.xlu2 %v286_v1, %s368_s16 }
  0x2a   :  { %160 = vrot.lane.b32.xlu0 %v289_v3, %s368_s16  ;;  %168 = vrot.lane.b32.xlu1 %v27_v0, %s369_s17 }
  0x2b   :  { %177 = vrot.lane.b32.xlu2 %v283_v2, %s369_s17 }
  0x32   :  { %186 = vrot.lane.b32.xlu0 %v286_v1, %s369_s17  ;;  %195 = vrot.lane.b32.xlu1 %v289_v3, %s369_s17 }
  0x33   :  { %203 = vrot.lane.b32.xlu2 %v27_v0, %s370_s5 }
  0x3a   :  { %212 = vrot.lane.b32.xlu0 %v283_v2, %s370_s5  ;;  %221 = vrot.lane.b32.xlu1 %v286_v1, %s370_s5 }
  0x3b   :  { %230 = vrot.lane.b32.xlu2 %v289_v3, %s370_s5 }
  0x42   :  { %238 = vrot.lane.b32.xlu0 %v27_v0, %s371_s6  ;;  %247 = vrot.lane.b32.xlu1 %v283_v2, %s371_s6 }
  0x43   :  { %256 = vrot.lane.b32.xlu2 %v286_v1, %s371_s6 }
  0x4a   :  { %265 = vrot.lane.b32.xlu0 %v289_v3, %s371_s6 }
  0x5d   :  { %v64_v4 = vpop.permute.xlu2 %63  }
  0x5e   :  { %292 = vst.msk [vmem:[%s651_s1 + $0x2] ss:$8 sm:$0xf] %vm3_vm0, %v64_v4  }
  0x5f   :  { %293 = vst.msk [vmem:[%s651_s1 + $0x2] ss:$8 sm:$0xf0] %vm3_vm0, %v64_v4  }
  0x65   :  { %v73_v5 = vpop.permute.xlu2 %72  }
  0x66   :  { %295 = vst.msk [vmem:[%s651_s1 + $0x42] ss:$8 sm:$0xf] %vm3_vm0, %v73_v5  }
  0x67   :  { %296 = vst.msk [vmem:[%s651_s1 + $0x42] ss:$8 sm:$0xf0] %vm3_vm0, %v73_v5  }
  0x6d   :  { %v99_v6 = vpop.permute.xlu2 %98  }
  0x6e   :  { %303 = vst.msk [vmem:[%s651_s1 + $0x3] ss:$8 sm:$0xf] %vm3_vm0, %v99_v6  }
  0x6f   :  { %304 = vst.msk [vmem:[%s651_s1 + $0x3] ss:$8 sm:$0xf0] %vm3_vm0, %v99_v6  }
  0x74   :  { %v29_v7 = vpop.permute.xlu0 %28   ;;  %v47_v8 = vpop.permute.xlu1 %46  }
  0x75   :  { %281 = vst.msk [vmem:[%s651_s1 + $0x1] ss:$8 sm:$0xf] %vm3_vm0, %v29_v7   ;;  %v126_v9 = vpop.permute.xlu2 %125  }
  0x76   :  { %282 = vst.msk [vmem:[%s651_s1 + $0x1] ss:$8 sm:$0xf0] %vm3_vm0, %v29_v7  }
  0x77   :  { %287 = vst.msk [vmem:[%s651_s1 + $0x81] ss:$8 sm:$0xf] %vm3_vm0, %v47_v8  }
  0x78   :  { %288 = vst.msk [vmem:[%s651_s1 + $0x81] ss:$8 sm:$0xf0] %vm3_vm0, %v47_v8  }
  0x79   :  { %312 = vst.msk [vmem:[%s651_s1 + $0xc3] ss:$8 sm:$0xf] %vm3_vm0, %v126_v9  }
  0x7a   :  { %313 = vst.msk [vmem:[%s651_s1 + $0xc3] ss:$8 sm:$0xf0] %vm3_vm0, %v126_v9  }
  0x7c   :  { %v38_v10 = vpop.permute.xlu0 %37   ;;  %v56_v11 = vpop.permute.xlu1 %55  }
  0x7d   :  { %284 = vst.msk [vmem:[%s651_s1 + $0x41] ss:$8 sm:$0xf] %vm3_vm0, %v38_v10   ;;  %v152_v12 = vpop.permute.xlu2 %151  }
  0x7e   :  { %285 = vst.msk [vmem:[%s651_s1 + $0x41] ss:$8 sm:$0xf0] %vm3_vm0, %v38_v10  }
  0x7f   :  { %290 = vst.msk [vmem:[%s651_s1 + $0xc1] ss:$8 sm:$0xf] %vm3_vm0, %v56_v11  }
  0x80   :  { %291 = vst.msk [vmem:[%s651_s1 + $0xc1] ss:$8 sm:$0xf0] %vm3_vm0, %v56_v11  }
  0x81   :  { %320 = vst.msk [vmem:[%s651_s1 + $0x84] ss:$8 sm:$0xf] %vm3_vm0, %v152_v12  }
  0x82   :  { %321 = vst.msk [vmem:[%s651_s1 + $0x84] ss:$8 sm:$0xf0] %vm3_vm0, %v152_v12  }
  0x84   :  { %v82_v13 = vpop.permute.xlu0 %81   ;;  %v91_v14 = vpop.permute.xlu1 %90  }
  0x85   :  { %298 = vst.msk [vmem:[%s651_s1 + $0x82] ss:$8 sm:$0xf] %vm3_vm0, %v82_v13   ;;  %v178_v15 = vpop.permute.xlu2 %177  }
  0x86   :  { %299 = vst.msk [vmem:[%s651_s1 + $0x82] ss:$8 sm:$0xf0] %vm3_vm0, %v82_v13  }
  0x87   :  { %301 = vst.msk [vmem:[%s651_s1 + $0xc2] ss:$8 sm:$0xf] %vm3_vm0, %v91_v14  }
  0x88   :  { %302 = vst.msk [vmem:[%s651_s1 + $0xc2] ss:$8 sm:$0xf0] %vm3_vm0, %v91_v14  }
  0x89   :  { %328 = vst.msk [vmem:[%s651_s1 + $0x45] ss:$8 sm:$0xf] %vm3_vm0, %v178_v15  }
  0x8a   :  { %329 = vst.msk [vmem:[%s651_s1 + $0x45] ss:$8 sm:$0xf0] %vm3_vm0, %v178_v15  }
  0x8c   :  { %v108_v16 = vpop.permute.xlu0 %107   ;;  %v117_v17 = vpop.permute.xlu1 %116  }
  0x8d   :  { %306 = vst.msk [vmem:[%s651_s1 + $0x43] ss:$8 sm:$0xf] %vm3_vm0, %v108_v16   ;;  %v204_v18 = vpop.permute.xlu2 %203  }
  0x8e   :  { %307 = vst.msk [vmem:[%s651_s1 + $0x43] ss:$8 sm:$0xf0] %vm3_vm0, %v108_v16  }
  0x8f   :  { %309 = vst.msk [vmem:[%s651_s1 + $0x83] ss:$8 sm:$0xf] %vm3_vm0, %v117_v17  }
  0x90   :  { %310 = vst.msk [vmem:[%s651_s1 + $0x83] ss:$8 sm:$0xf0] %vm3_vm0, %v117_v17  }
  0x91   :  { %336 = vst.msk [vmem:[%s651_s1 + $0x6] ss:$8 sm:$0xf] %vm3_vm0, %v204_v18  }
  0x92   :  { %337 = vst.msk [vmem:[%s651_s1 + $0x6] ss:$8 sm:$0xf0] %vm3_vm0, %v204_v18  }
  0x94   :  { %v134_v19 = vpop.permute.xlu0 %133   ;;  %v143_v20 = vpop.permute.xlu1 %142  }
  0x95   :  { %314 = vst.msk [vmem:[%s651_s1 + $0x4] ss:$8 sm:$0xf] %vm3_vm0, %v134_v19   ;;  %v231_v21 = vpop.permute.xlu2 %230  }
  0x96   :  { %315 = vst.msk [vmem:[%s651_s1 + $0x4] ss:$8 sm:$0xf0] %vm3_vm0, %v134_v19  }
  0x97   :  { %317 = vst.msk [vmem:[%s651_s1 + $0x44] ss:$8 sm:$0xf] %vm3_vm0, %v143_v20  }
  0x98   :  { %318 = vst.msk [vmem:[%s651_s1 + $0x44] ss:$8 sm:$0xf0] %vm3_vm0, %v143_v20  }
  0x99   :  { %345 = vst.msk [vmem:[%s651_s1 + $0xc6] ss:$8 sm:$0xf] %vm3_vm0, %v231_v21  }
  0x9a   :  { %346 = vst.msk [vmem:[%s651_s1 + $0xc6] ss:$8 sm:$0xf0] %vm3_vm0, %v231_v21  }
  0x9c   :  { %v161_v22 = vpop.permute.xlu0 %160   ;;  %v169_v23 = vpop.permute.xlu1 %168  }
  0x9d   :  { %323 = vst.msk [vmem:[%s651_s1 + $0xc4] ss:$8 sm:$0xf] %vm3_vm0, %v161_v22   ;;  %v257_v24 = vpop.permute.xlu2 %256  }
  0x9e   :  { %324 = vst.msk [vmem:[%s651_s1 + $0xc4] ss:$8 sm:$0xf0] %vm3_vm0, %v161_v22  }
  0x9f   :  { %325 = vst.msk [vmem:[%s651_s1 + $0x5] ss:$8 sm:$0xf] %vm3_vm0, %v169_v23  }
  0xa0   :  { %326 = vst.msk [vmem:[%s651_s1 + $0x5] ss:$8 sm:$0xf0] %vm3_vm0, %v169_v23  }
  0xa1   :  { %353 = vst.msk [vmem:[%s651_s1 + $0x87] ss:$8 sm:$0xf] %vm3_vm0, %v257_v24  }
  0xa2   :  { %354 = vst.msk [vmem:[%s651_s1 + $0x87] ss:$8 sm:$0xf0] %vm3_vm0, %v257_v24  }
  0xa4   :  { %v187_v25 = vpop.permute.xlu0 %186   ;;  %v196_v26 = vpop.permute.xlu1 %195  }
  0xa5   :  { %331 = vst.msk [vmem:[%s651_s1 + $0x85] ss:$8 sm:$0xf] %vm3_vm0, %v187_v25  }
  0xa6   :  { %332 = vst.msk [vmem:[%s651_s1 + $0x85] ss:$8 sm:$0xf0] %vm3_vm0, %v187_v25  }
  0xa7   :  { %334 = vst.msk [vmem:[%s651_s1 + $0xc5] ss:$8 sm:$0xf] %vm3_vm0, %v196_v26  }
  0xa8   :  { %335 = vst.msk [vmem:[%s651_s1 + $0xc5] ss:$8 sm:$0xf0] %vm3_vm0, %v196_v26  }
  0xac   :  { %v213_v27 = vpop.permute.xlu0 %212   ;;  %v222_v28 = vpop.permute.xlu1 %221  }
  0xad   :  { %339 = vst.msk [vmem:[%s651_s1 + $0x46] ss:$8 sm:$0xf] %vm3_vm0, %v213_v27  }
  0xae   :  { %340 = vst.msk [vmem:[%s651_s1 + $0x46] ss:$8 sm:$0xf0] %vm3_vm0, %v213_v27  }
  0xaf   :  { %342 = vst.msk [vmem:[%s651_s1 + $0x86] ss:$8 sm:$0xf] %vm3_vm0, %v222_v28  }
  0xb0   :  { %343 = vst.msk [vmem:[%s651_s1 + $0x86] ss:$8 sm:$0xf0] %vm3_vm0, %v222_v28  }
  0xb4   :  { %v239_v29 = vpop.permute.xlu0 %238   ;;  %v248_v30 = vpop.permute.xlu1 %247  }
  0xb5   :  { %347 = vst.msk [vmem:[%s651_s1 + $0x7] ss:$8 sm:$0xf] %vm3_vm0, %v239_v29  }
  0xb6   :  { %348 = vst.msk [vmem:[%s651_s1 + $0x7] ss:$8 sm:$0xf0] %vm3_vm0, %v239_v29  }
  0xb7   :  { %350 = vst.msk [vmem:[%s651_s1 + $0x47] ss:$8 sm:$0xf] %vm3_vm0, %v248_v30  }
  0xb8   :  { %351 = vst.msk [vmem:[%s651_s1 + $0x47] ss:$8 sm:$0xf0] %vm3_vm0, %v248_v30  }
  0xbc   :  { %v266_v31 = vpop.permute.xlu0 %265  }
  0xbd   :  { %356 = vst.msk [vmem:[%s651_s1 + $0xc7] ss:$8 sm:$0xf] %vm3_vm0, %v266_v31  }
  0xbe   :  { %357 = vst.msk [vmem:[%s651_s1 + $0xc7] ss:$8 sm:$0xf0] %vm3_vm0, %v266_v31  }

// kernel: squeezenet_forward.1
= control target key start
LH: loop header
LB: loop body
LE: loop exit
PB: predicated region body
PF: predicated region fallthrough
CT: control target
= control target key end

     0   :  { %vm107_vm0 = vcmask 1043456   ;;  %s1825_s11 = smov 119   ;;  %s1826_s12 = smov 121   ;;  %v1833_v8 = vmov 0   ;;  %vm133_vm1 = vcmask 588800   ;;  %s2377_s0 = inlined_call_operand.vmem [shape: f32[4,4,128], index: 0, kind: input, shape index: {}]   ;;  %s2378_s8 = inlined_call_operand.vmem [shape: f32[9,128], index: 8, kind: input, shape index: {}]   ;;  %s2379_s2 = inlined_call_operand.vmem [shape: f32[16,1], index: 2, kind: input, shape index: {}]   ;;  %s2380_s1 = inlined_call_operand.vmem [shape: f32[16,72], index: 1, kind: input, shape index: {}]   ;;  %s2381_s4 = inlined_call_operand.vmem [shape: f32[16,1], index: 4, kind: input, shape index: {}]   ;;  %s2382_s3 = inlined_call_operand.vmem [shape: f32[16,72], index: 3, kind: input, shape index: {}]   ;;  %s2383_s5 = inlined_call_operand.vmem [shape: f32[9,16,4], index: 5, kind: input, shape index: {}]   ;;  %s2384_s7 = inlined_call_operand.<no memory space> [shape: f32[1,1], index: 7, kind: input, shape index: {}]   ;;  %s2385_s6 = inlined_call_operand.vmem [shape: f32[9,1,4], index: 6, kind: input, shape index: {}]   ;;  %s2386_s9 = inlined_call_operand.vmem [shape: f32[1,128], index: 9, kind: output, shape index: {}]  }
   0x1   :  { %v106_v0 = vld [vmem:[%s2377_s0] sm:$0xf]  ;;  %s1827_s13 = smov 1   ;;  %s1828_s14 = smov 120   ;;  %v1899_v2 = vld [vmem:[%s2378_s8 + $0x8] ss:$0 sm:$0xff]  ;;  %1737 = vset.pattern.permute.xlu0 %v1833_v8  ;;  %1736 = vset.pattern.permute.xlu2 %v1833_v8 }
   0x2   :  { %v108_v1 = vsel %vm107_vm0, %v106_v0, 0.0  ;;  %s1829_s15 = smov 127   ;;  %s1830_s16 = smov 7   ;;  %v76_v6 = vld [vmem:[%s2379_s2 + $0x8] sm:$0xff]  ;;  %v75_v7 = vld [vmem:[%s2379_s2] sm:$0xff]  ;;  %1738 = vset.pattern.permute.xlu1 %v1833_v8 }
   0x3   :  { %130 = vrot.lane.b32.xlu0 %v108_v1, %s1825_s11  ;;  %124 = vrot.lane.b32.xlu1 %v108_v1, %s1826_s12  ;;  %s1831_s17 = smov 8   ;;  %s1832_s18 = smov 9   ;;  %v34_v9 = vld [vmem:[%s2378_s8] sm:$0xff]  ;;  %v1943_v31 = vld [vmem:[%s2380_s1 + $0x8] sm:$0xff] }
   0x4   :  { %118 = vrot.lane.b32.xlu2 %v108_v1, %s1827_s13  ;;  %v1911_v11 = vperm.slane %v34_v9, 7  ;;  %v1913_v12 = vperm.slane %v34_v9, 6  ;;  %v1915_v13 = vperm.slane %v34_v9, 5  ;;  %v1920_v19 = vperm.slane %v34_v9, 3  ;;  %v1936_v30 = vld [vmem:[%s2380_s1] sm:$0xff] }
   0x5   :  { %v1922_v20 = vperm.slane %v34_v9, 2  ;;  %v1924_v22 = vperm.slane %v34_v9, 1  ;;  %v1929_v26 = vperm.slane %v34_v9, 0 }
   0xb   :  { %127 = vrot.lane.b32.xlu0 %v108_v1, %s1828_s14  ;;  %121 = vrot.lane.b32.xlu1 %v108_v1, %s1829_s15 }
   0xc   :  { %115 = vrot.lane.b32.xlu2 %v108_v1, %s1830_s16 }
  0x13   :  { %112 = vrot.lane.b32.xlu0 %v108_v1, %s1831_s17  ;;  %109 = vrot.lane.b32.xlu1 %v108_v1, %s1832_s18 }
  0x14   :  { %79 = vperm.xlu2 %1736, %v75_v7  }
  0x1b   :  { %84 = vperm.xlu0 %1737, %v76_v6  }
  0x5e   :  { %v119_v10 = vpop.permute.xlu2 %118 }
  0x5f   :  { %v120_v24 = vmul.f32 %v119_v10, %v1920_v19  ;;  %v1631_v10 = vld [vmem:[%s2377_s0 + $0x4] sm:$0xf] }
  0x66   :  { %v116_v21 = vpop.permute.xlu2 %115 }
  0x67   :  { %v117_v25 = vmul.f32 %v116_v21, %v1922_v20 }
  0x6e   :  { %v1947_v32 = vpop.permute.xlu2 %79 }
  0x75   :  { %v131_v3 = vpop.permute.xlu0 %130  ;;  %v125_v4 = vpop.permute.xlu1 %124 }
  0x76   :  { %v132_v5 = vmul.f32 %v1899_v2, %v131_v3  ;;  %v126_v17 = vmul.f32 %v125_v4, %v1913_v12 }
  0x78   :  { %147 = vmatpush.msra.mxu0 %v132_v5 }
  0x7d   :  { %v128_v14 = vpop.permute.xlu0 %127  ;;  %v122_v15 = vpop.permute.xlu1 %121 }
  0x7e   :  { %v129_v16 = vmul.f32 %v128_v14, %v1911_v11  ;;  %v123_v18 = vmul.f32 %v122_v15, %v1915_v13 }
  0x80   :  { %148 = vmatpush.msra.mxu0 %v129_v16 }
  0x82   :  { %149 = vmatpush.msra.mxu0 %v126_v17 }
  0x84   :  { %150 = vmatpush.msra.mxu0 %v123_v18 }
  0x85   :  { %v113_v23 = vpop.permute.xlu0 %112  ;;  %v110_v27 = vpop.permute.xlu1 %109 }
  0x86   :  { %1626 = vmatpush.msk.msra.mxu0 %vm107_vm0, %v106_v0  ;;  %v114_v28 = vmul.f32 %v113_v23, %v1924_v22  ;;  %v111_v29 = vmul.f32 %v110_v27, %v1929_v26 }
  0x88   :  { %152 = vmatpush.msra.mxu0 %v120_v24 }
  0x8a   :  { %153 = vmatpush.msra.mxu0 %v117_v25 }
  0x8c   :  { %154 = vmatpush.msra.mxu0 %v114_v28 }
  0x8d   :  { %v1950_v36 = vpop.permute.xlu0 %84 }
  0x8e   :  { %155 = vmatpush.msra.mxu0 %v111_v29 }
  0x8f   :  { %1627 = vmatmul.msk.f32.vlgmr.msra.gmra.mxu0 %vm133_vm1, %v1936_v30 }
  0x97   :  { %1628 = vmatmul.msk.f32.gmra.mxu0 %vm133_vm1, %v1943_v31 }
 0x10c   :  { %v157_v33 = vpop.f32.mrf.mxu0 }
 0x10d   :  { %v158_v34 = vadd.f32 %v157_v33, %v1947_v32 }
 0x10f   :  { %v1629_v35 = vmul.f32 -1.442695, %v158_v34 }
 0x111   :  { %1740 = vpow2.f32 %v1629_v35 }
 0x114   :  { %v160_v37 = vpop.f32.mrf.mxu0 }
 0x115   :  { %v161_v38 = vadd.f32 %v160_v37, %v1950_v36 }
 0x117   :  { %v1741_v39 = vpop.eup %1740  ;;  %v1630_v40 = vmul.f32 -1.442695, %v161_v38 }
 0x118   :  { %v169_v41 = vadd.f32 1.0, %v1741_v39 }
 0x119   :  { %1742 = vpow2.f32 %v1630_v40 }
 0x11a   :  { %1744 = vrcp.f32 %v169_v41  ;;  %v182_v47 = vand.u32 2147483648, %v169_v41  ;;  %v180_v49 = vand.u32 2147483647, %v169_v41  ;;  %vm176_vm3 = vweird.f32 %v169_v41 }
 0x11b   :  { %1746 = vtanh.f32 %v161_v38 }
 0x11c   :  { %v183_v53 = vor.u32 1.1754944e-38, %v182_v47  ;;  %vm181_vm5 = vcmp.eq.f32.partialorder %v180_v49, 8.507059e+37 }
 0x11f   :  { %v1743_v42 = vpop.eup %1742 }
 0x120   :  { %v1745_v43 = vpop.eup %1744  ;;  %v170_v44 = vadd.f32 1.0, %v1743_v42 }
 0x121   :  { %v172_v45 = vmul.f32 %v1745_v43, %v169_v41  ;;  %vm177_vm2 = vweird.f32 %v1745_v43  ;;  %v1747_v50 = vpop.eup %1746 }
 0x122   :  { %1748 = vrcp.f32 %v170_v44  ;;  %vm178_vm4 = vmor %vm176_vm3, %vm177_vm2  ;;  %v204_v56 = vrot.slane %v1747_v50, 4  ;;  %vm191_vm6 = vweird.f32 %v170_v44  ;;  %v197_v1 = vand.u32 2147483648, %v170_v44 }
 0x123   :  { %v173_v46 = vsub.f32 1.0, %v172_v45  ;;  %v195_v3 = vand.u32 2147483647, %v170_v44 }
 0x124   :  { %v198_v6 = vor.u32 1.1754944e-38, %v197_v1 }
 0x125   :  { %v174_v48 = vmul.f32 %v1745_v43, %v173_v46  ;;  %vm196_vm9 = vcmp.eq.f32.partialorder %v195_v3, 8.507059e+37 }
 0x127   :  { %v175_v51 = vadd.f32 %v1745_v43, %v174_v48 }
 0x128   :  { %v1749_v52 = vpop.eup %1748 }
 0x129   :  { %v179_v54 = vsel %vm178_vm4, %v1745_v43, %v175_v51  ;;  %v187_v55 = vmul.f32 %v1749_v52, %v170_v44  ;;  %vm192_vm7 = vweird.f32 %v1749_v52 }
 0x12a   :  { %v184_v57 = vsel %vm181_vm5, %v183_v53, %v179_v54  ;;  %vm193_vm8 = vmor %vm191_vm6, %vm192_vm7 }
 0x12b   :  { %v188_v58 = vsub.f32 1.0, %v187_v55  ;;  %v206_v59 = vmul.f32 %v204_v56, %v184_v57  ;;  %v202_v60 = vmul.f32 0.0, %v184_v57 }
 0x12d   :  { %v208_v61 = vrot.slane %v206_v59, 4  ;;  %v189_v62 = vmul.f32 %v1749_v52, %v188_v58 }
 0x12f   :  { %v1953_v63 = vadd.f32 %v208_v61, %v202_v60  ;;  %v190_v0 = vadd.f32 %v1749_v52, %v189_v62 }
 0x131   :  { %1750 = vtanh.f32 %v1953_v63  ;;  %v194_v4 = vsel %vm193_vm8, %v1749_v52, %v190_v0 }
 0x132   :  { %v199_v8 = vsel %vm196_vm9, %v198_v6, %v194_v4 }
 0x137   :  { %v1751_v5 = vpop.eup %1750 }
 0x138   :  { %v213_v7 = vrot.slane %v1751_v5, 4 }
 0x13a   :  { %v215_v9 = vmul.f32 %v213_v7, %v199_v8 }
 0x13c   :  { %v219_v14 = vrot.slane %v215_v9, 4 }
 0x13e   :  { %v221_v15 = vsel %vm107_vm0, %v1631_v10, %v219_v14 }
 0x13f   :  { %231 = vrot.lane.b32.xlu0 %v221_v15, %s1827_s13  ;;  %240 = vrot.lane.b32.xlu2 %v221_v15, %s1828_s14 }
 0x140   :  { %243 = vrot.lane.b32.xlu1 %v221_v15, %s1825_s11 }
 0x147   :  { %222 = vrot.lane.b32.xlu0 %v221_v15, %s1832_s18  ;;  %234 = vrot.lane.b32.xlu2 %v221_v15, %s1829_s15 }
 0x148   :  { %237 = vrot.lane.b32.xlu1 %v221_v15, %s1826_s12 }
 0x14f   :  { %225 = vrot.lane.b32.xlu2 %v221_v15, %s1831_s17 }
 0x150   :  { %228 = vrot.lane.b32.xlu1 %v221_v15, %s1830_s16 }
 0x199   :  { %v241_v16 = vpop.permute.xlu2 %240 }
 0x19a   :  { %v242_v21 = vmul.f32 %v241_v16, %v1911_v11 }
 0x1a1   :  { %v235_v23 = vpop.permute.xlu2 %234 }
 0x1a2   :  { %v236_v28 = vmul.f32 %v235_v23, %v1915_v13 }
 0x1a9   :  { %v226_v33 = vpop.permute.xlu2 %225 }
 0x1aa   :  { %v227_v38 = vmul.f32 %v226_v33, %v1924_v22 }
 0x1b1   :  { %v232_v24 = vpop.permute.xlu0 %231 }
 0x1b2   :  { %v244_v17 = vpop.permute.xlu1 %243  ;;  %v233_v29 = vmul.f32 %v232_v24, %v1920_v19 }
 0x1b3   :  { %v245_v18 = vmul.f32 %v1899_v2, %v244_v17 }
 0x1b5   :  { %253 = vmatpush.msra.mxu1 %v245_v18 }
 0x1b7   :  { %254 = vmatpush.msra.mxu1 %v242_v21 }
 0x1b9   :  { %v223_v37 = vpop.permute.xlu0 %222 }
 0x1ba   :  { %v238_v25 = vpop.permute.xlu1 %237  ;;  %v224_v39 = vmul.f32 %v223_v37, %v1929_v26 }
 0x1bb   :  { %v239_v27 = vmul.f32 %v238_v25, %v1913_v12 }
 0x1bd   :  { %255 = vmatpush.msra.mxu1 %v239_v27 }
 0x1bf   :  { %256 = vmatpush.msra.mxu1 %v236_v28 }
 0x1c1   :  { %257 = vmatpush.msra.mxu1 %v221_v15 }
 0x1c2   :  { %v229_v34 = vpop.permute.xlu1 %228 }
 0x1c3   :  { %v230_v35 = vmul.f32 %v229_v34, %v1922_v20  ;;  %258 = vmatpush.msra.mxu1 %v233_v29 }
 0x1c5   :  { %259 = vmatpush.msra.mxu1 %v230_v35 }
 0x1c7   :  { %260 = vmatpush.msra.mxu1 %v227_v38 }
 0x1c9   :  { %261 = vmatpush.msra.mxu1 %v224_v39 }
 0x1ca   :  { %1632 = vmatmul.msk.f32.vlgmr.msra.gmra.mxu1 %vm133_vm1, %v1936_v30 }
 0x1d2   :  { %1633 = vmatmul.msk.f32.gmra.mxu1 %vm133_vm1, %v1943_v31 }
 0x247   :  { %v263_v40 = vpop.f32.mrf.mxu1 }
 0x248   :  { %v264_v41 = vadd.f32 %v263_v40, %v1947_v32 }
 0x24a   :  { %v1634_v42 = vmul.f32 -1.442695, %v264_v41 }
 0x24c   :  { %1752 = vpow2.f32 %v1634_v42 }
 0x24f   :  { %v266_v43 = vpop.f32.mrf.mxu1 }
 0x250   :  { %v267_v44 = vadd.f32 %v266_v43, %v1950_v36 }
 0x252   :  { %v1753_v45 = vpop.eup %1752  ;;  %v1635_v46 = vmul.f32 -1.442695, %v267_v44 }
 0x253   :  { %v275_v47 = vadd.f32 1.0, %v1753_v45 }
 0x254   :  { %1754 = vpow2.f32 %v1635_v46 }
 0x255   :  { %1756 = vrcp.f32 %v275_v47  ;;  %v288_v53 = vand.u32 2147483648, %v275_v47  ;;  %v286_v55 = vand.u32 2147483647, %v275_v47  ;;  %vm282_vm11 = vweird.f32 %v275_v47 }
 0x256   :  { %1758 = vtanh.f32 %v267_v44 }
 0x257   :  { %v289_v59 = vor.u32 1.1754944e-38, %v288_v53  ;;  %vm287_vm13 = vcmp.eq.f32.partialorder %v286_v55, 8.507059e+37 }
 0x25a   :  { %v1755_v48 = vpop.eup %1754 }
 0x25b   :  { %v1757_v49 = vpop.eup %1756  ;;  %v276_v50 = vadd.f32 1.0, %v1755_v48 }
 0x25c   :  { %v278_v51 = vmul.f32 %v1757_v49, %v275_v47  ;;  %vm283_vm10 = vweird.f32 %v1757_v49  ;;  %v1759_v56 = vpop.eup %1758 }
 0x25d   :  { %1760 = vrcp.f32 %v276_v50  ;;  %vm284_vm12 = vmor %vm282_vm11, %vm283_vm10  ;;  %v310_v62 = vrot.slane %v1759_v56, 4  ;;  %v303_v9 = vand.u32 2147483648, %v276_v50  ;;  %vm297_vm15 = vweird.f32 %v276_v50 }
 0x25e   :  { %v279_v52 = vsub.f32 1.0, %v278_v51  ;;  %v301_v10 = vand.u32 2147483647, %v276_v50 }
 0x25f   :  { %v304_v16 = vor.u32 1.1754944e-38, %v303_v9 }
 0x260   :  { %v280_v54 = vmul.f32 %v1757_v49, %v279_v52  ;;  %vm302_vm3 = vcmp.eq.f32.partialorder %v301_v10, 8.507059e+37 }
 0x262   :  { %v281_v57 = vadd.f32 %v1757_v49, %v280_v54 }
 0x263   :  { %v1761_v58 = vpop.eup %1760 }
 0x264   :  { %v285_v60 = vsel %vm284_vm12, %v1757_v49, %v281_v57  ;;  %v293_v61 = vmul.f32 %v1761_v58, %v276_v50  ;;  %vm298_vm14 = vweird.f32 %v1761_v58 }
 0x265   :  { %v290_v0 = vsel %vm287_vm13, %v289_v59, %v285_v60  ;;  %vm299_vm2 = vmor %vm297_vm15, %vm298_vm14 }
 0x266   :  { %v294_v1 = vsub.f32 1.0, %v293_v61  ;;  %v312_v3 = vmul.f32 %v310_v62, %v290_v0  ;;  %v308_v4 = vmul.f32 %v290_v0, %v1953_v63  ;;  %v1636_v63 = vld [vmem:[%s2377_s0 + $0x8] sm:$0xf] }
 0x268   :  { %v314_v5 = vrot.slane %v312_v3, 4  ;;  %v295_v6 = vmul.f32 %v1761_v58, %v294_v1 }
 0x26a   :  { %v1983_v7 = vadd.f32 %v314_v5, %v308_v4  ;;  %v296_v8 = vadd.f32 %v1761_v58, %v295_v6 }
 0x26c   :  { %1762 = vtanh.f32 %v1983_v7  ;;  %v300_v14 = vsel %vm299_vm2, %v1761_v58, %v296_v8 }
 0x26d   :  { %v305_v18 = vsel %vm302_vm3, %v304_v16, %v300_v14 }
 0x272   :  { %v1763_v15 = vpop.eup %1762 }
 0x273   :  { %v319_v17 = vrot.slane %v1763_v15, 4 }
 0x275   :  { %v321_v21 = vmul.f32 %v319_v17, %v305_v18 }
 0x277   :  { %v325_v23 = vrot.slane %v321_v21, 4 }
 0x279   :  { %v327_v24 = vsel %vm107_vm0, %v1636_v63, %v325_v23 }
 0x27a   :  { %343 = vrot.lane.b32.xlu0 %v327_v24, %s1826_s12  ;;  %346 = vrot.lane.b32.xlu2 %v327_v24, %s1828_s14 }
 0x27b   :  { %349 = vrot.lane.b32.xlu1 %v327_v24, %s1825_s11 }
 0x282   :  { %334 = vrot.lane.b32.xlu0 %v327_v24, %s1830_s16  ;;  %337 = vrot.lane.b32.xlu2 %v327_v24, %s1827_s13 }
 0x283   :  { %340 = vrot.lane.b32.xlu1 %v327_v24, %s1829_s15 }
 0x28a   :  { %328 = vrot.lane.b32.xlu2 %v327_v24, %s1832_s18 }
 0x28b   :  { %331 = vrot.lane.b32.xlu1 %v327_v24, %s1831_s17 }
 0x2d4   :  { %v347_v25 = vpop.permute.xlu2 %346 }
 0x2d5   :  { %v348_v33 = vmul.f32 %v347_v25, %v1911_v11 }
 0x2dc   :  { %v338_v35 = vpop.permute.xlu2 %337 }
 0x2dd   :  { %v339_v40 = vmul.f32 %v338_v35, %v1920_v19 }
 0x2e4   :  { %v329_v42 = vpop.permute.xlu2 %328 }
 0x2e5   :  { %v330_v45 = vmul.f32 %v329_v42, %v1929_v26 }
 0x2ec   :  { %v344_v29 = vpop.permute.xlu0 %343 }
 0x2ed   :  { %v350_v27 = vpop.permute.xlu1 %349  ;;  %v345_v34 = vmul.f32 %v344_v29, %v1913_v12 }
 0x2ee   :  { %v351_v28 = vmul.f32 %v1899_v2, %v350_v27 }
 0x2f0   :  { %359 = vmatpush.msra.mxu2 %v351_v28 }
 0x2f2   :  { %360 = vmatpush.msra.mxu2 %v348_v33 }
 0x2f4   :  { %361 = vmatpush.msra.mxu2 %v345_v34  ;;  %v335_v39 = vpop.permute.xlu0 %334 }
 0x2f5   :  { %v341_v37 = vpop.permute.xlu1 %340  ;;  %v336_v41 = vmul.f32 %v335_v39, %v1922_v20 }
 0x2f6   :  { %v342_v38 = vmul.f32 %v341_v37, %v1915_v13 }
 0x2f8   :  { %362 = vmatpush.msra.mxu2 %v342_v38 }
 0x2fa   :  { %363 = vmatpush.msra.mxu2 %v327_v24 }
 0x2fc   :  { %364 = vmatpush.msra.mxu2 %v339_v40 }
 0x2fd   :  { %v332_v43 = vpop.permute.xlu1 %331 }
 0x2fe   :  { %v333_v44 = vmul.f32 %v332_v43, %v1924_v22  ;;  %365 = vmatpush.msra.mxu2 %v336_v41 }
 0x300   :  { %366 = vmatpush.msra.mxu2 %v333_v44 }
 0x302   :  { %367 = vmatpush.msra.mxu2 %v330_v45 }
 0x303   :  { %1637 = vmatmul.msk.f32.vlgmr.msra.gmra.mxu2 %vm133_vm1, %v1936_v30 }
 0x30b   :  { %1638 = vmatmul.msk.f32.gmra.mxu2 %vm133_vm1, %v1943_v31 }
 0x386   :  { %v369_v46 = vpop.f32.mrf.mxu2 }
 0x387   :  { %v370_v47 = vadd.f32 %v369_v46, %v1947_v32 }
 0x389   :  { %v1639_v48 = vmul.f32 -1.442695, %v370_v47 }
 0x38b   :  { %1764 = vpow2.f32 %v1639_v48 }
 0x38e   :  { %v372_v49 = vpop.f32.mrf.mxu2 }
 0x38f   :  { %v373_v50 = vadd.f32 %v372_v49, %v1950_v36 }
 0x391   :  { %v1765_v51 = vpop.eup %1764  ;;  %v1640_v52 = vmul.f32 -1.442695, %v373_v50 }
 0x392   :  { %v381_v53 = vadd.f32 1.0, %v1765_v51 }
 0x393   :  { %1766 = vpow2.f32 %v1640_v52 }
 0x394   :  { %1768 = vrcp.f32 %v381_v53  ;;  %v394_v59 = vand.u32 2147483648, %v381_v53  ;;  %v392_v61 = vand.u32 2147483647, %v381_v53  ;;  %vm388_vm5 = vweird.f32 %v381_v53 }
 0x395   :  { %1770 = vtanh.f32 %v373_v50 }
 0x396   :  { %v395_v3 = vor.u32 1.1754944e-38, %v394_v59  ;;  %vm393_vm7 = vcmp.eq.f32.partialorder %v392_v61, 8.507059e+37 }
 0x399   :  { %v1767_v54 = vpop.eup %1766 }
 0x39a   :  { %v1769_v55 = vpop.eup %1768  ;;  %v382_v56 = vadd.f32 1.0, %v1767_v54 }
 0x39b   :  { %v384_v57 = vmul.f32 %v1769_v55, %v381_v53  ;;  %vm389_vm4 = vweird.f32 %v1769_v55  ;;  %v1771_v62 = vpop.eup %1770 }
 0x39c   :  { %1772 = vrcp.f32 %v382_v56  ;;  %vm390_vm6 = vmor %vm388_vm5, %vm389_vm4  ;;  %v416_v6 = vrot.slane %v1771_v62, 4  ;;  %v409_v21 = vand.u32 2147483648, %v382_v56  ;;  %vm403_vm9 = vweird.f32 %v382_v56 }
 0x39d   :  { %v385_v58 = vsub.f32 1.0, %v384_v57  ;;  %v407_v63 = vand.u32 2147483647, %v382_v56 }
 0x39e   :  { %v410_v25 = vor.u32 1.1754944e-38, %v409_v21 }
 0x39f   :  { %v386_v60 = vmul.f32 %v1769_v55, %v385_v58  ;;  %vm408_vm11 = vcmp.eq.f32.partialorder %v407_v63, 8.507059e+37 }
 0x3a1   :  { %v387_v0 = vadd.f32 %v1769_v55, %v386_v60 }
 0x3a2   :  { %v1773_v1 = vpop.eup %1772 }
 0x3a3   :  { %v391_v4 = vsel %vm390_vm6, %v1769_v55, %v387_v0  ;;  %v399_v5 = vmul.f32 %v1773_v1, %v382_v56  ;;  %vm404_vm8 = vweird.f32 %v1773_v1 }
 0x3a4   :  { %v396_v8 = vsel %vm393_vm7, %v395_v3, %v391_v4  ;;  %vm405_vm10 = vmor %vm403_vm9, %vm404_vm8 }
 0x3a5   :  { %v400_v9 = vsub.f32 1.0, %v399_v5  ;;  %v418_v10 = vmul.f32 %v416_v6, %v396_v8  ;;  %v414_v14 = vmul.f32 %v396_v8, %v1983_v7  ;;  %v1641_v7 = vld [vmem:[%s2377_s0 + $0xc] sm:$0xf] }
 0x3a7   :  { %v420_v15 = vrot.slane %v418_v10, 4  ;;  %v401_v16 = vmul.f32 %v1773_v1, %v400_v9 }
 0x3a9   :  { %v2013_v17 = vadd.f32 %v420_v15, %v414_v14  ;;  %v402_v18 = vadd.f32 %v1773_v1, %v401_v16 }
 0x3ab   :  { %1774 = vtanh.f32 %v2013_v17  ;;  %v406_v23 = vsel %vm405_vm10, %v1773_v1, %v402_v18 }
 0x3ac   :  { %v411_v28 = vsel %vm408_vm11, %v410_v25, %v406_v23 }
 0x3b1   :  { %v1775_v24 = vpop.eup %1774 }
 0x3b2   :  { %v425_v27 = vrot.slane %v1775_v24, 4 }
 0x3b4   :  { %v427_v29 = vmul.f32 %v425_v27, %v411_v28 }
 0x3b6   :  { %v431_v33 = vrot.slane %v427_v29, 4 }
 0x3b8   :  { %v433_v34 = vsel %vm107_vm0, %v1641_v7, %v431_v33 }
 0x3b9   :  { %449 = vrot.lane.b32.xlu2 %v433_v34, %s1826_s12  ;;  %452 = vrot.lane.b32.xlu1 %v433_v34, %s1828_s14 }
 0x3ba   :  { %455 = vrot.lane.b32.xlu0 %v433_v34, %s1825_s11 }
 0x3c1   :  { %440 = vrot.lane.b32.xlu2 %v433_v34, %s1830_s16  ;;  %443 = vrot.lane.b32.xlu1 %v433_v34, %s1827_s13 }
 0x3c2   :  { %446 = vrot.lane.b32.xlu0 %v433_v34, %s1829_s15 }
 0x3c9   :  { %434 = vrot.lane.b32.xlu1 %v433_v34, %s1832_s18 }
 0x3ca   :  { %437 = vrot.lane.b32.xlu0 %v433_v34, %s1831_s17 }
 0x413   :  { %v450_v39 = vpop.permute.xlu2 %449 }
 0x414   :  { %v451_v41 = vmul.f32 %v450_v39, %v1913_v12  ;;  %v87_v39 = vld [vmem:[%s2381_s4] sm:$0xff] }
 0x41b   :  { %v441_v45 = vpop.permute.xlu2 %440 }
 0x41c   :  { %v442_v47 = vmul.f32 %v441_v45, %v1922_v20 }
 0x42b   :  { %v453_v35 = vpop.permute.xlu1 %452 }
 0x42c   :  { %v456_v37 = vpop.permute.xlu0 %455  ;;  %v454_v40 = vmul.f32 %v453_v35, %v1911_v11 }
 0x42d   :  { %v457_v38 = vmul.f32 %v1899_v2, %v456_v37 }
 0x42f   :  { %465 = vmatpush.msra.mxu3 %v457_v38 }
 0x431   :  { %466 = vmatpush.msra.mxu3 %v454_v40 }
 0x433   :  { %467 = vmatpush.msra.mxu3 %v451_v41  ;;  %v444_v42 = vpop.permute.xlu1 %443 }
 0x434   :  { %v447_v43 = vpop.permute.xlu0 %446  ;;  %v445_v46 = vmul.f32 %v444_v42, %v1920_v19 }
 0x435   :  { %v448_v44 = vmul.f32 %v447_v43, %v1915_v13 }
 0x437   :  { %468 = vmatpush.msra.mxu3 %v448_v44 }
 0x439   :  { %469 = vmatpush.msra.mxu3 %v433_v34 }
 0x43b   :  { %470 = vmatpush.msra.mxu3 %v445_v46  ;;  %v435_v48 = vpop.permute.xlu1 %434 }
 0x43c   :  { %v438_v49 = vpop.permute.xlu0 %437  ;;  %v436_v51 = vmul.f32 %v435_v48, %v1929_v26 }
 0x43d   :  { %v439_v50 = vmul.f32 %v438_v49, %v1924_v22  ;;  %471 = vmatpush.msra.mxu3 %v442_v47 }
 0x43f   :  { %472 = vmatpush.msra.mxu3 %v439_v50 }
 0x441   :  { %473 = vmatpush.msra.mxu3 %v436_v51 }
 0x442   :  { %1642 = vmatmul.msk.f32.vlgmr.msra.gmra.mxu3 %vm133_vm1, %v1936_v30 }
 0x44a   :  { %1643 = vmatmul.msk.f32.gmra.mxu3 %vm133_vm1, %v1943_v31 }
 0x4c5   :  { %v475_v52 = vpop.f32.mrf.mxu3 }
 0x4c6   :  { %v476_v53 = vadd.f32 %v475_v52, %v1947_v32 }
 0x4c8   :  { %v1644_v54 = vmul.f32 -1.442695, %v476_v53 }
 0x4ca   :  { %1776 = vpow2.f32 %v1644_v54  ;;  %v46_v54 = vld [vmem:[%s2382_s3] sm:$0xff] }
 0x4cd   :  { %v478_v55 = vpop.f32.mrf.mxu3 }
 0x4ce   :  { %v479_v56 = vadd.f32 %v478_v55, %v1950_v36  ;;  %v47_v55 = vld [vmem:[%s2382_s3 + $0x8] sm:$0xff] }
 0x4d0   :  { %v1777_v57 = vpop.eup %1776  ;;  %v1645_v58 = vmul.f32 -1.442695, %v479_v56 }
 0x4d1   :  { %v487_v59 = vadd.f32 1.0, %v1777_v57 }
 0x4d2   :  { %1778 = vpow2.f32 %v1645_v58 }
 0x4d3   :  { %1780 = vrcp.f32 %v487_v59  ;;  %v500_v0 = vand.u32 2147483648, %v487_v59  ;;  %v498_v32 = vand.u32 2147483647, %v487_v59  ;;  %vm494_vm13 = vweird.f32 %v487_v59 }
 0x4d4   :  { %1782 = vtanh.f32 %v479_v56 }
 0x4d5   :  { %v501_v5 = vor.u32 1.1754944e-38, %v500_v0  ;;  %vm499_vm15 = vcmp.eq.f32.partialorder %v498_v32, 8.507059e+37 }
 0x4d8   :  { %v1779_v60 = vpop.eup %1778 }
 0x4d9   :  { %v1781_v61 = vpop.eup %1780  ;;  %v488_v62 = vadd.f32 1.0, %v1779_v60 }
 0x4da   :  { %v490_v30 = vmul.f32 %v1781_v61, %v487_v59  ;;  %vm495_vm12 = vweird.f32 %v1781_v61  ;;  %v1783_v3 = vpop.eup %1782 }
 0x4db   :  { %1784 = vrcp.f32 %v488_v62  ;;  %vm496_vm14 = vmor %vm494_vm13, %vm495_vm12  ;;  %v522_v9 = vrot.slane %v1783_v3, 4  ;;  %v515_v24 = vand.u32 2147483648, %v488_v62  ;;  %vm509_vm3 = vweird.f32 %v488_v62 }
 0x4dc   :  { %v491_v31 = vsub.f32 1.0, %v490_v30  ;;  %v513_v25 = vand.u32 2147483647, %v488_v62  ;;  %vm644_vm13 = vcmask 31744  }
 0x4dd   :  { %v516_v29 = vor.u32 1.1754944e-38, %v515_v24 }
 0x4de   :  { %v492_v1 = vmul.f32 %v1781_v61, %v491_v31  ;;  %vm514_vm5 = vcmp.eq.f32.partialorder %v513_v25, 8.507059e+37 }
 0x4e0   :  { %v493_v4 = vadd.f32 %v1781_v61, %v492_v1 }
 0x4e1   :  { %v1785_v36 = vpop.eup %1784 }
 0x4e2   :  { %v497_v6 = vsel %vm496_vm14, %v1781_v61, %v493_v4  ;;  %v505_v8 = vmul.f32 %v1785_v36, %v488_v62  ;;  %vm510_vm2 = vweird.f32 %v1785_v36 }
 0x4e3   :  { %v502_v10 = vsel %vm499_vm15, %v501_v5, %v497_v6  ;;  %vm511_vm4 = vmor %vm509_vm3, %vm510_vm2 }
 0x4e4   :  { %v506_v14 = vsub.f32 1.0, %v505_v8  ;;  %v524_v15 = vmul.f32 %v522_v9, %v502_v10  ;;  %v520_v16 = vmul.f32 %v502_v10, %v2013_v17  ;;  %v88_v17 = vld [vmem:[%s2381_s4 + $0x8] sm:$0xff] }
 0x4e6   :  { %v526_v18 = vrot.slane %v524_v15, 4  ;;  %v507_v21 = vmul.f32 %v1785_v36, %v506_v14 }
 0x4e8   :  { %v528_v63 = vadd.f32 %v526_v18, %v520_v16  ;;  %v508_v23 = vadd.f32 %v1785_v36, %v507_v21 }
 0x4ea   :  { %1786 = vtanh.f32 %v528_v63  ;;  %v512_v27 = vsel %vm511_vm4, %v1785_v36, %v508_v23 }
 0x4eb   :  { %v517_v33 = vsel %vm514_vm5, %v516_v29, %v512_v27 }
 0x4f0   :  { %v1787_v28 = vpop.eup %1786 }
 0x4f1   :  { %v531_v7 = vrot.slane %v1787_v28, 4 }
 0x4f3   :  { %v533_v34 = vmul.f32 %v531_v7, %v517_v33 }
 0x4f5   :  { %v534_v35 = vsel %vm107_vm0, %v533_v34, 0.0 }
 0x4f6   :  { %550 = vrot.lane.b32.xlu1 %v534_v35, %s1826_s12  ;;  %553 = vrot.lane.b32.xlu0 %v534_v35, %s1828_s14 }
 0x4f7   :  { %556 = vrot.lane.b32.xlu2 %v534_v35, %s1825_s11 }
 0x4fe   :  { %541 = vrot.lane.b32.xlu1 %v534_v35, %s1830_s16  ;;  %544 = vrot.lane.b32.xlu0 %v534_v35, %s1827_s13 }
 0x4ff   :  { %547 = vrot.lane.b32.xlu2 %v534_v35, %s1829_s15 }
 0x506   :  { %535 = vrot.lane.b32.xlu0 %v534_v35, %s1832_s18  ;;  %91 = vperm.xlu1 %1738, %v87_v39  }
 0x507   :  { %538 = vrot.lane.b32.xlu2 %v534_v35, %s1831_s17 }
 0x50f   :  { %96 = vperm.xlu2 %1736, %v88_v17  }
 0x551   :  { %v557_v37 = vpop.permute.xlu2 %556 }
 0x552   :  { %v558_v38 = vmul.f32 %v1899_v2, %v557_v37 }
 0x554   :  { %572 = vmatpush.msrb.mxu0 %v558_v38 }
 0x559   :  { %v548_v40 = vpop.permute.xlu2 %547 }
 0x55a   :  { %v549_v45 = vmul.f32 %v548_v40, %v1915_v13 }
 0x561   :  { %v539_v49 = vpop.permute.xlu2 %538 }
 0x562   :  { %v540_v51 = vmul.f32 %v539_v49, %v1924_v22 }
 0x568   :  { %v551_v41 = vpop.permute.xlu1 %550  ;;  %v554_v42 = vpop.permute.xlu0 %553 }
 0x569   :  { %v555_v43 = vmul.f32 %v554_v42, %v1911_v11  ;;  %v552_v44 = vmul.f32 %v551_v41, %v1913_v12  ;;  %v2078_v60 = vpop.permute.xlu2 %96 }
 0x56b   :  { %573 = vmatpush.msrb.mxu0 %v555_v43  ;;  %v2096_v43 = vld [vmem:[%s2383_s5 + $0x20] sm:$0xff] }
 0x56d   :  { %574 = vmatpush.msrb.mxu0 %v552_v44  ;;  %v2104_v44 = vld [vmem:[%s2383_s5 + $0x28] sm:$0xff] }
 0x56f   :  { %575 = vmatpush.msrb.mxu0 %v549_v45 }
 0x570   :  { %v542_v46 = vpop.permute.xlu1 %541  ;;  %v545_v47 = vpop.permute.xlu0 %544 }
 0x571   :  { %v546_v48 = vmul.f32 %v545_v47, %v1920_v19  ;;  %1646 = vmatpush.msk.msrb.mxu0 %vm107_vm0, %v533_v34  ;;  %v543_v50 = vmul.f32 %v542_v46, %v1922_v20 }
 0x573   :  { %577 = vmatpush.msrb.mxu0 %v546_v48  ;;  %v2112_v48 = vld [vmem:[%s2383_s5] sm:$0xff] }
 0x575   :  { %578 = vmatpush.msrb.mxu0 %v543_v50 }
 0x577   :  { %579 = vmatpush.msrb.mxu0 %v540_v51  ;;  %v2118_v51 = vld [vmem:[%s2383_s5 + $0x10] sm:$0xff] }
 0x578   :  { %v536_v52 = vpop.permute.xlu0 %535  ;;  %v2075_v56 = vpop.permute.xlu1 %91 }
 0x579   :  { %v537_v53 = vmul.f32 %v536_v52, %v1929_v26 }
 0x57b   :  { %580 = vmatpush.msrb.mxu0 %v537_v53 }
 0x57c   :  { %1647 = vmatmul.msk.f32.vlgmr.msrb.gmra.mxu0 %vm133_vm1, %v46_v54 }
 0x584   :  { %1648 = vmatmul.msk.f32.gmra.mxu0 %vm133_vm1, %v47_v55 }
 0x5f9   :  { %v582_v57 = vpop.f32.mrf.mxu0 }
 0x5fa   :  { %v583_v58 = vadd.f32 %v582_v57, %v2075_v56  ;;  %v2133_v57 = vld [vmem:[%s2383_s5 + $0x50] sm:$0xff] }
 0x5fc   :  { %v1649_v59 = vmul.f32 -1.442695, %v583_v58 }
 0x5fe   :  { %1788 = vpow2.f32 %v1649_v59  ;;  %v2144_v59 = vld [vmem:[%s2383_s5 + $0x18] sm:$0xff] }
 0x601   :  { %v585_v61 = vpop.f32.mrf.mxu0 }
 0x602   :  { %v586_v62 = vadd.f32 %v585_v61, %v2078_v60 }
 0x604   :  { %v1789_v30 = vpop.eup %1788  ;;  %v1650_v31 = vmul.f32 -1.442695, %v586_v62 }
 0x605   :  { %v594_v0 = vadd.f32 1.0, %v1789_v30 }
 0x606   :  { %1790 = vpow2.f32 %v1650_v31  ;;  %v2158_v31 = vld [vmem:[%s2383_s5 + $0x58] sm:$0xff] }
 0x607   :  { %1792 = vrcp.f32 %v594_v0  ;;  %v607_v5 = vand.u32 2147483648, %v594_v0  ;;  %v605_v8 = vand.u32 2147483647, %v594_v0  ;;  %vm601_vm6 = vweird.f32 %v594_v0 }
 0x608   :  { %1794 = vtanh.f32 %v586_v62 }
 0x609   :  { %v608_v15 = vor.u32 1.1754944e-38, %v607_v5  ;;  %vm606_vm8 = vcmp.eq.f32.partialorder %v605_v8, 8.507059e+37  ;;  %v2199_v5 = vld [vmem:[%s2383_s5 + $0x68] sm:$0xff]  ;;  %v2215_v8 = vld [vmem:[%s2383_s5 + $0x80] sm:$0xff] }
 0x60c   :  { %v1791_v1 = vpop.eup %1790 }
 0x60d   :  { %v1793_v32 = vpop.eup %1792  ;;  %v595_v3 = vadd.f32 1.0, %v1791_v1  ;;  %v2164_v1 = vld [vmem:[%s2383_s5 + $0x30] sm:$0xff] }
 0x60e   :  { %v597_v4 = vmul.f32 %v1793_v32, %v594_v0  ;;  %vm602_vm1 = vweird.f32 %v1793_v32  ;;  %v1795_v9 = vpop.eup %1794 }
 0x60f   :  { %1796 = vrcp.f32 %v595_v3  ;;  %vm603_vm7 = vmor %vm601_vm6, %vm602_vm1  ;;  %v629_v21 = vrot.slane %v1795_v9, 4  ;;  %v622_v33 = vand.u32 2147483648, %v595_v3  ;;  %vm616_vm10 = vweird.f32 %v595_v3  ;;  %v2224_v9 = vld [vmem:[%s2383_s5 + $0x78] sm:$0xff] }
 0x610   :  { %v598_v36 = vsub.f32 1.0, %v597_v4  ;;  %v620_v34 = vand.u32 2147483647, %v595_v3  ;;  %v2189_v4 = vld [vmem:[%s2383_s5 + $0x38] sm:$0xff] }
 0x611   :  { %v623_v37 = vor.u32 1.1754944e-38, %v622_v33 }
 0x612   :  { %v599_v6 = vmul.f32 %v1793_v32, %v598_v36  ;;  %vm621_vm12 = vcmp.eq.f32.partialorder %v620_v34, 8.507059e+37  ;;  %v2194_v36 = vld [vmem:[%s2383_s5 + $0x48] sm:$0xff] }
 0x614   :  { %v600_v10 = vadd.f32 %v1793_v32, %v599_v6  ;;  %v2210_v6 = vld [vmem:[%s2383_s5 + $0x70] sm:$0xff] }
 0x615   :  { %v1797_v14 = vpop.eup %1796 }
 0x616   :  { %v604_v16 = vsel %vm603_vm7, %v1793_v32, %v600_v10  ;;  %v612_v18 = vmul.f32 %v1797_v14, %v595_v3  ;;  %vm617_vm9 = vweird.f32 %v1797_v14  ;;  %v2169_v32 = vld [vmem:[%s2383_s5 + $0x40] sm:$0xff]  ;;  %v2229_v10 = vld [vmem:[%s2383_s5 + $0x88] sm:$0xff] }
 0x617   :  { %v609_v63 = vsel %vm606_vm8, %v608_v15, %v604_v16  ;;  %vm618_vm11 = vmor %vm616_vm10, %vm617_vm9  ;;  %v2175_v3 = vld [vmem:[%s2383_s5 + $0x60] sm:$0xff] }
 0x618   :  { %v613_v23 = vsub.f32 1.0, %v612_v18  ;;  %v631_v24 = vmul.f32 %v629_v21, %v609_v63  ;;  %v627_v25 = vmul.f32 0.0, %v609_v63 }
 0x61a   :  { %v633_v27 = vrot.slane %v631_v24, 4  ;;  %v614_v28 = vmul.f32 %v1797_v14, %v613_v23 }
 0x61c   :  { %v2081_v29 = vadd.f32 %v633_v27, %v627_v25  ;;  %v615_v7 = vadd.f32 %v1797_v14, %v614_v28 }
 0x61e   :  { %1798 = vtanh.f32 %v2081_v29  ;;  %v619_v35 = vsel %vm618_vm11, %v1797_v14, %v615_v7 }
 0x61f   :  { %v624_v39 = vsel %vm621_vm12, %v623_v37, %v619_v35 }
 0x624   :  { %v1799_v17 = vpop.eup %1798 }
 0x625   :  { %v638_v38 = vrot.slane %v1799_v17, 4 }
 0x627   :  { %v640_v40 = vmul.f32 %v638_v38, %v624_v39 }
 0x629   :  { %716 = vrot.lane.b32.xlu2 %v640_v40, %s1830_s16  ;;  %641 = vrot.lane.b32.xlu1 %v640_v40, %s1832_s18 }
 0x62a   :  { %679 = vrot.lane.b32.xlu0 %v640_v40, %s1831_s17 }
 0x631   :  { %935 = vrot.lane.b32.xlu2 %v640_v40, %s1825_s11  ;;  %824 = vrot.lane.b32.xlu1 %v640_v40, %s1829_s15 }
 0x632   :  { %753 = vrot.lane.b32.xlu0 %v640_v40, %s1827_s13 }
 0x639   :  { %898 = vrot.lane.b32.xlu1 %v640_v40, %s1828_s14 }
 0x63a   :  { %861 = vrot.lane.b32.xlu0 %v640_v40, %s1826_s12 }
 0x683   :  { %v717_v41 = vpop.permute.xlu2 %716 }
 0x684   :  { %v718_v42 = vmul.f32 %v717_v41, %v1922_v20 }
 0x686   :  { %1657 = vmatpush.msk.msrb.mxu3 %vm107_vm0, %v718_v42 }
 0x687   :  { %1658 = vmatmul.msk.f32.vlgmr.msrb.gmra.mxu3 %vm644_vm13, %v2096_v43 }
 0x68b   :  { %v936_v49 = vpop.permute.xlu2 %935 }
 0x68c   :  { %v937_v52 = vmul.f32 %v1899_v2, %v936_v49  ;;  %v2139_v2 = vld [vmem:[%s2383_s5 + $0x8] sm:$0xff] }
 0x68f   :  { %1659 = vmatmul.msk.f32.gmra.mxu3 %vm644_vm13, %v2104_v44 }
 0x69b   :  { %v642_v45 = vpop.permute.xlu1 %641 }
 0x69c   :  { %v643_v46 = vmul.f32 %v642_v45, %v1929_v26  ;;  %v680_v47 = vpop.permute.xlu0 %679 }
 0x69d   :  { %v681_v50 = vmul.f32 %v680_v47, %v1924_v22 }
 0x69e   :  { %1651 = vmatpush.msk.msrb.mxu1 %vm107_vm0, %v643_v46 }
 0x69f   :  { %1654 = vmatpush.msk.msrb.mxu2 %vm107_vm0, %v681_v50  ;;  %1652 = vmatmul.msk.f32.vlgmr.msrb.gmra.mxu1 %vm644_vm13, %v2112_v48 }
 0x6a0   :  { %1655 = vmatmul.msk.f32.vlgmr.msrb.gmra.mxu2 %vm644_vm13, %v2118_v51 }
 0x6a1   :  { %1663 = vmatpush.msk.msra.mxu2 %vm107_vm0, %v640_v40 }
 0x6a3   :  { %1675 = vmatpush.msk.msrb.mxu2 %vm107_vm0, %v937_v52  ;;  %v825_v53 = vpop.permute.xlu1 %824 }
 0x6a4   :  { %v826_v54 = vmul.f32 %v825_v53, %v1915_v13  ;;  %v754_v55 = vpop.permute.xlu0 %753 }
 0x6a5   :  { %v755_v58 = vmul.f32 %v754_v55, %v1920_v19 }
 0x6a6   :  { %1666 = vmatpush.msk.msra.mxu3 %vm107_vm0, %v826_v54 }
 0x6a7   :  { %1660 = vmatpush.msk.msra.mxu1 %vm107_vm0, %v755_v58  ;;  %1667 = vmatmul.msk.f32.vlgmr.msra.gmra.mxu3 %vm644_vm13, %v2133_v57 }
 0x6a8   :  { %1653 = vmatmul.msk.f32.gmra.mxu1 %vm644_vm13, %v2139_v2  ;;  %1656 = vmatmul.msk.f32.gmra.mxu2 %vm644_vm13, %v2144_v59 }
 0x6ab   :  { %v899_v61 = vpop.permute.xlu1 %898 }
 0x6ac   :  { %v900_v62 = vmul.f32 %v899_v61, %v1911_v11  ;;  %v862_v30 = vpop.permute.xlu0 %861 }
 0x6ad   :  { %v863_v0 = vmul.f32 %v862_v30, %v1913_v12 }
 0x6ae   :  { %1672 = vmatpush.msk.msrb.mxu1 %vm107_vm0, %v900_v62 }
 0x6af   :  { %1669 = vmatpush.msk.msra.mxu0 %vm107_vm0, %v863_v0  ;;  %1668 = vmatmul.msk.f32.gmra.mxu3 %vm644_vm13, %v2158_v31 }
 0x6b0   :  { %1661 = vmatmul.msk.f32.vlgmr.msra.gmra.mxu1 %vm644_vm13, %v2164_v1  ;;  %1664 = vmatmul.msk.f32.vlgmr.msra.gmra.mxu2 %vm644_vm13, %v2169_v32 }
 0x6b1   :  { %1670 = vmatmul.msk.f32.vlgmr.msra.gmra.mxu0 %vm644_vm13, %v2175_v3 }
 0x6b8   :  { %1662 = vmatmul.msk.f32.gmra.mxu1 %vm644_vm13, %v2189_v4  ;;  %1665 = vmatmul.msk.f32.gmra.mxu2 %vm644_vm13, %v2194_v36 }
 0x6b9   :  { %1671 = vmatmul.msk.f32.gmra.mxu0 %vm644_vm13, %v2199_v5 }
 0x6c0   :  { %1673 = vmatmul.msk.f32.vlgmr.msrb.gmra.mxu1 %vm644_vm13, %v2210_v6  ;;  %1676 = vmatmul.msk.f32.vlgmr.msrb.gmra.mxu2 %vm644_vm13, %v2215_v8 }
 0x6c8   :  { %1674 = vmatmul.msk.f32.gmra.mxu1 %vm644_vm13, %v2224_v9  ;;  %1677 = vmatmul.msk.f32.gmra.mxu2 %vm644_vm13, %v2229_v10 }
 0x70a   :  { %v745_v16 = vpop.f32.mrf.mxu3 }
 0x712   :  { %v748_v63 = vpop.f32.mrf.mxu3 }
 0x71c   :  { %v671_v14 = vpop.f32.mrf.mxu1 }
 0x71d   :  { %v677_v24 = vadd.f32 %v671_v14, %v2075_v56 }
 0x723   :  { %v708_v15 = vpop.f32.mrf.mxu2 }
 0x724   :  { %v714_v25 = vadd.f32 %v708_v15, %v677_v24 }
 0x725   :  { %v674_v18 = vpop.f32.mrf.mxu1 }
 0x726   :  { %v751_v28 = vadd.f32 %v745_v16, %v714_v25  ;;  %v678_v33 = vadd.f32 %v674_v18, %v2078_v60 }
 0x72a   :  { %v853_v35 = vpop.f32.mrf.mxu3 }
 0x72b   :  { %v711_v21 = vpop.f32.mrf.mxu2 }
 0x72c   :  { %v715_v17 = vadd.f32 %v711_v21, %v678_v33 }
 0x72d   :  { %v782_v23 = vpop.f32.mrf.mxu1 }
 0x72e   :  { %v788_v34 = vadd.f32 %v782_v23, %v751_v28  ;;  %v890_v38 = vpop.f32.mrf.mxu0  ;;  %v752_v40 = vadd.f32 %v748_v63, %v715_v17 }
 0x732   :  { %v856_v49 = vpop.f32.mrf.mxu3 }
 0x733   :  { %v816_v27 = vpop.f32.mrf.mxu2 }
 0x734   :  { %v822_v37 = vadd.f32 %v816_v27, %v788_v34 }
 0x735   :  { %v785_v7 = vpop.f32.mrf.mxu1 }
 0x736   :  { %v859_v41 = vadd.f32 %v853_v35, %v822_v37  ;;  %v789_v45 = vadd.f32 %v785_v7, %v752_v40  ;;  %v893_v55 = vpop.f32.mrf.mxu0 }
 0x738   :  { %v896_v46 = vadd.f32 %v890_v38, %v859_v41 }
 0x73b   :  { %v819_v39 = vpop.f32.mrf.mxu2 }
 0x73c   :  { %v823_v47 = vadd.f32 %v819_v39, %v789_v45 }
 0x73d   :  { %v927_v42 = vpop.f32.mrf.mxu1 }
 0x73e   :  { %v933_v50 = vadd.f32 %v927_v42, %v896_v46  ;;  %v860_v53 = vadd.f32 %v856_v49, %v823_v47 }
 0x740   :  { %v897_v62 = vadd.f32 %v893_v55, %v860_v53 }
 0x743   :  { %v964_v52 = vpop.f32.mrf.mxu2 }
 0x744   :  { %v970_v54 = vadd.f32 %v964_v52, %v933_v50 }
 0x745   :  { %v930_v61 = vpop.f32.mrf.mxu1 }
 0x746   :  { %v1678_v58 = vmul.f32 -1.442695, %v970_v54  ;;  %v934_v30 = vadd.f32 %v930_v61, %v897_v62 }
 0x748   :  { %1800 = vpow2.f32 %v1678_v58 }
 0x74b   :  { %v967_v0 = vpop.f32.mrf.mxu2 }
 0x74c   :  { %v971_v14 = vadd.f32 %v967_v0, %v934_v30 }
 0x74e   :  { %v1801_v15 = vpop.eup %1800  ;;  %v1679_v16 = vmul.f32 -1.442695, %v971_v14 }
 0x74f   :  { %v978_v18 = vadd.f32 1.0, %v1801_v15 }
 0x750   :  { %1802 = vpow2.f32 %v1679_v16 }
 0x751   :  { %1804 = vrcp.f32 %v978_v18  ;;  %v991_v27 = vand.u32 2147483648, %v978_v18  ;;  %v989_v7 = vand.u32 2147483647, %v978_v18  ;;  %vm985_vm15 = vweird.f32 %v978_v18 }
 0x752   :  { %1806 = vtanh.f32 %v971_v14 }
 0x753   :  { %v992_v17 = vor.u32 1.1754944e-38, %v991_v27  ;;  %vm990_vm3 = vcmp.eq.f32.partialorder %v989_v7, 8.507059e+37 }
 0x756   :  { %v1803_v21 = vpop.eup %1802 }
 0x757   :  { %v1805_v63 = vpop.eup %1804  ;;  %v979_v23 = vadd.f32 1.0, %v1803_v21 }
 0x758   :  { %v981_v24 = vmul.f32 %v1805_v63, %v978_v18  ;;  %vm986_vm14 = vweird.f32 %v1805_v63  ;;  %v1807_v33 = vpop.eup %1806  ;;  %v2263_v18 = vld [vmem:[%s2378_s8 + $0x8] ss:$0 sm:$0xff] }
 0x759   :  { %1808 = vrcp.f32 %v979_v23  ;;  %vm987_vm2 = vmor %vm985_vm15, %vm986_vm14  ;;  %v1013_v39 = vrot.slane %v1807_v33, 4  ;;  %v1006_v52 = vand.u32 2147483648, %v979_v23  ;;  %vm1000_vm5 = vweird.f32 %v979_v23 }
 0x75a   :  { %v982_v25 = vsub.f32 1.0, %v981_v24  ;;  %v1004_v53 = vand.u32 2147483647, %v979_v23 }
 0x75b   :  { %v1007_v58 = vor.u32 1.1754944e-38, %v1006_v52 }
 0x75c   :  { %v983_v28 = vmul.f32 %v1805_v63, %v982_v25  ;;  %vm1005_vm6 = vcmp.eq.f32.partialorder %v1004_v53, 8.507059e+37 }
 0x75e   :  { %v984_v34 = vadd.f32 %v1805_v63, %v983_v28 }
 0x75f   :  { %v1809_v35 = vpop.eup %1808 }
 0x760   :  { %v988_v37 = vsel %vm987_vm2, %v1805_v63, %v984_v34  ;;  %v996_v38 = vmul.f32 %v1809_v35, %v979_v23  ;;  %vm1001_vm4 = vweird.f32 %v1809_v35 }
 0x761   :  { %v993_v40 = vsel %vm990_vm3, %v992_v17, %v988_v37  ;;  %vm1002_vm1 = vmor %vm1000_vm5, %vm1001_vm4 }
 0x762   :  { %v997_v41 = vsub.f32 1.0, %v996_v38  ;;  %v1015_v42 = vmul.f32 %v1013_v39, %v993_v40  ;;  %v1011_v45 = vmul.f32 %v993_v40, %v2081_v29 }
 0x764   :  { %v1017_v46 = vrot.slane %v1015_v42, 4  ;;  %v998_v47 = vmul.f32 %v1809_v35, %v997_v41 }
 0x766   :  { %v2238_v49 = vadd.f32 %v1017_v46, %v1011_v45  ;;  %v999_v50 = vadd.f32 %v1809_v35, %v998_v47 }
 0x768   :  { %1810 = vtanh.f32 %v2238_v49  ;;  %v1003_v54 = vsel %vm1002_vm1, %v1809_v35, %v999_v50 }
 0x769   :  { %v1008_v62 = vsel %vm1005_vm6, %v1007_v58, %v1003_v54 }
 0x76e   :  { %v1811_v55 = vpop.eup %1810 }
 0x76f   :  { %v1022_v61 = vrot.slane %v1811_v55, 4 }
 0x771   :  { %v1024_v30 = vmul.f32 %v1022_v61, %v1008_v62 }
 0x773   :  { %1056 = vrot.lane.b32.xlu1 %v1024_v30, %s1831_s17  ;;  %1118 = vrot.lane.b32.xlu0 %v1024_v30, %s1827_s13 }
 0x774   :  { %1025 = vrot.lane.b32.xlu2 %v1024_v30, %s1832_s18 }
 0x77b   :  { %1177 = vrot.lane.b32.xlu1 %v1024_v30, %s1829_s15  ;;  %1239 = vrot.lane.b32.xlu0 %v1024_v30, %s1828_s14 }
 0x77c   :  { %1087 = vrot.lane.b32.xlu2 %v1024_v30, %s1830_s16 }
 0x783   :  { %1208 = vrot.lane.b32.xlu0 %v1024_v30, %s1826_s12 }
 0x784   :  { %1270 = vrot.lane.b32.xlu2 %v1024_v30, %s1825_s11 }
 0x7ce   :  { %v1026_v29 = vpop.permute.xlu2 %1025 }
 0x7cf   :  { %v1027_v0 = vmul.f32 %v1026_v29, %v1929_v26 }
 0x7d1   :  { %1680 = vmatpush.msk.msrb.mxu3 %vm107_vm0, %v1027_v0 }
 0x7d2   :  { %1681 = vmatmul.msk.f32.vlgmr.msrb.gmra.mxu3 %vm644_vm13, %v2112_v48 }
 0x7d3   :  { %1692 = vmatpush.msk.msra.mxu3 %vm107_vm0, %v1024_v30 }
 0x7d6   :  { %v1088_v14 = vpop.permute.xlu2 %1087 }
 0x7d7   :  { %v1089_v15 = vmul.f32 %v1088_v14, %v1922_v20 }
 0x7d9   :  { %1686 = vmatpush.msk.msra.mxu1 %vm107_vm0, %v1089_v15 }
 0x7da   :  { %1682 = vmatmul.msk.f32.gmra.mxu3 %vm644_vm13, %v2139_v2  ;;  %1687 = vmatmul.msk.f32.vlgmr.msra.gmra.mxu1 %vm644_vm13, %v2096_v43 }
 0x7de   :  { %v1271_v16 = vpop.permute.xlu2 %1270 }
 0x7df   :  { %v1272_v48 = vmul.f32 %v2263_v18, %v1271_v16 }
 0x7e1   :  { %1704 = vmatpush.msk.msrb.mxu3 %vm107_vm0, %v1272_v48 }
 0x7e2   :  { %1693 = vmatmul.msk.f32.vlgmr.msra.gmra.mxu3 %vm644_vm13, %v2169_v32  ;;  %1688 = vmatmul.msk.f32.gmra.mxu1 %vm644_vm13, %v2104_v44 }
 0x7e5   :  { %v1057_v2 = vpop.permute.xlu1 %1056  ;;  %v1119_v21 = vpop.permute.xlu0 %1118 }
 0x7e6   :  { %v1058_v43 = vmul.f32 %v1057_v2, %v1924_v22  ;;  %v1120_v63 = vmul.f32 %v1119_v21, %v1920_v19 }
 0x7e8   :  { %1683 = vmatpush.msk.msrb.mxu0 %vm107_vm0, %v1058_v43  ;;  %1689 = vmatpush.msk.msra.mxu2 %vm107_vm0, %v1120_v63  ;;  %v14_v63 = vstv %s2384_s7 }
 0x7e9   :  { %1684 = vmatmul.msk.f32.vlgmr.msrb.gmra.mxu0 %vm644_vm13, %v2118_v51  ;;  %1690 = vmatmul.msk.f32.vlgmr.msra.gmra.mxu2 %vm644_vm13, %v2164_v1  ;;  %15 = vst [vmem:[#allocation2] sm:$0x1] %v14_v63 }
 0x7ea   :  { %1694 = vmatmul.msk.f32.gmra.mxu3 %vm644_vm13, %v2194_v36 }
 0x7ed   :  { %v1178_v44 = vpop.permute.xlu1 %1177  ;;  %v1240_v32 = vpop.permute.xlu0 %1239 }
 0x7ee   :  { %v1179_v23 = vmul.f32 %v1178_v44, %v1915_v13  ;;  %v1241_v24 = vmul.f32 %v1240_v32, %v1911_v11 }
 0x7f0   :  { %1695 = vmatpush.msk.msra.mxu0 %vm107_vm0, %v1179_v23  ;;  %1701 = vmatpush.msk.msrb.mxu2 %vm107_vm0, %v1241_v24 }
 0x7f1   :  { %1685 = vmatmul.msk.f32.gmra.mxu0 %vm644_vm13, %v2144_v59  ;;  %1691 = vmatmul.msk.f32.gmra.mxu2 %vm644_vm13, %v2189_v4 }
 0x7f2   :  { %1705 = vmatmul.msk.f32.vlgmr.msrb.gmra.mxu3 %vm644_vm13, %v2215_v8 }
 0x7f5   :  { %v1209_v51 = vpop.permute.xlu0 %1208 }
 0x7f6   :  { %v1210_v1 = vmul.f32 %v1209_v51, %v1913_v12 }
 0x7f8   :  { %1698 = vmatpush.msk.msrb.mxu1 %vm107_vm0, %v1210_v1 }
 0x7f9   :  { %1696 = vmatmul.msk.f32.vlgmr.msra.gmra.mxu0 %vm644_vm13, %v2133_v57  ;;  %1702 = vmatmul.msk.f32.vlgmr.msrb.gmra.mxu2 %vm644_vm13, %v2210_v6 }
 0x7fa   :  { %1699 = vmatmul.msk.f32.vlgmr.msrb.gmra.mxu1 %vm644_vm13, %v2175_v3  ;;  %1706 = vmatmul.msk.f32.gmra.mxu3 %vm644_vm13, %v2229_v10 }
 0x801   :  { %1697 = vmatmul.msk.f32.gmra.mxu0 %vm644_vm13, %v2158_v31  ;;  %1703 = vmatmul.msk.f32.gmra.mxu2 %vm644_vm13, %v2224_v9 }
 0x802   :  { %1700 = vmatmul.msk.f32.gmra.mxu1 %vm644_vm13, %v2199_v5 }
 0x855   :  { %v1048_v59 = vpop.f32.mrf.mxu3 }
 0x856   :  { %v1054_v8 = vadd.f32 %v1048_v59, %v2075_v56 }
 0x857   :  { %v1110_v4 = vpop.f32.mrf.mxu1 }
 0x85d   :  { %v1051_v57 = vpop.f32.mrf.mxu3 }
 0x85e   :  { %v1055_v31 = vadd.f32 %v1051_v57, %v2078_v60 }
 0x85f   :  { %v1113_v27 = vpop.f32.mrf.mxu1 }
 0x865   :  { %v1169_v6 = vpop.f32.mrf.mxu3 }
 0x866   :  { %v1079_v36 = vpop.f32.mrf.mxu0 }
 0x867   :  { %v1085_v3 = vadd.f32 %v1079_v36, %v1054_v8 }
 0x869   :  { %v1116_v28 = vadd.f32 %v1110_v4, %v1085_v3 }
 0x86c   :  { %v1141_v25 = vpop.f32.mrf.mxu2 }
 0x86d   :  { %v1172_v7 = vpop.f32.mrf.mxu3  ;;  %v1147_v33 = vadd.f32 %v1141_v25, %v1116_v28 }
 0x86e   :  { %v1082_v10 = vpop.f32.mrf.mxu0 }
 0x86f   :  { %v1086_v9 = vadd.f32 %v1082_v10, %v1055_v31  ;;  %v1175_v35 = vadd.f32 %v1169_v6, %v1147_v33 }
 0x871   :  { %v1117_v17 = vadd.f32 %v1113_v27, %v1086_v9 }
 0x874   :  { %v1144_v34 = vpop.f32.mrf.mxu2 }
 0x875   :  { %v1148_v39 = vadd.f32 %v1144_v34, %v1117_v17  ;;  %v1293_v40 = vpop.f32.mrf.mxu3 }
 0x876   :  { %v1200_v5 = vpop.f32.mrf.mxu0 }
 0x877   :  { %v1206_v37 = vadd.f32 %v1200_v5, %v1175_v35  ;;  %v1231_v38 = vpop.f32.mrf.mxu1  ;;  %v1176_v42 = vadd.f32 %v1172_v7, %v1148_v39 }
 0x879   :  { %v1237_v41 = vadd.f32 %v1231_v38, %v1206_v37  ;;  %v69_v37 = vld [vmem:[%s2385_s6 + $0x3] sm:$0x1]  ;;  %v70_v38 = vld [vmem:[%s2385_s6 + $0x4] sm:$0x1] }
 0x87c   :  { %v1262_v56 = vpop.f32.mrf.mxu2 }
 0x87d   :  { %v1268_v45 = vadd.f32 %v1262_v56, %v1237_v41  ;;  %v1296_v55 = vpop.f32.mrf.mxu3 }
 0x87e   :  { %v1203_v46 = vpop.f32.mrf.mxu0 }
 0x87f   :  { %v1207_v47 = vadd.f32 %v1203_v46, %v1176_v42  ;;  %v1299_v50 = vadd.f32 %v1293_v40, %v1268_v45  ;;  %v1234_v52 = vpop.f32.mrf.mxu1  ;;  %v66_v46 = vld [vmem:[%s2385_s6] sm:$0x1] }
 0x881   :  { %v1707_v53 = vmul.f32 -1.442695, %v1299_v50  ;;  %v1238_v60 = vadd.f32 %v1234_v52, %v1207_v47 }
 0x883   :  { %1812 = vpow2.f32 %v1707_v53 }
 0x884   :  { %v1265_v54 = vpop.f32.mrf.mxu2 }
 0x885   :  { %v1269_v58 = vadd.f32 %v1265_v54, %v1238_v60  ;;  %v68_v60 = vld [vmem:[%s2385_s6 + $0x2] sm:$0x1]  ;;  %v74_v54 = vld [vmem:[%s2385_s6 + $0x8] sm:$0x1] }
 0x887   :  { %v1300_v61 = vadd.f32 %v1296_v55, %v1269_v58  ;;  %v72_v55 = vld [vmem:[%s2385_s6 + $0x6] sm:$0x1] }
 0x889   :  { %v1813_v62 = vpop.eup %1812  ;;  %v1708_v30 = vmul.f32 -1.442695, %v1300_v61 }
 0x88a   :  { %v1307_v29 = vadd.f32 1.0, %v1813_v62 }
 0x88b   :  { %1814 = vpow2.f32 %v1708_v30 }
 0x88c   :  { %1816 = vrcp.f32 %v1307_v29  ;;  %v1320_v2 = vand.u32 2147483648, %v1307_v29  ;;  %v1318_v43 = vand.u32 2147483647, %v1307_v29  ;;  %vm1314_vm8 = vweird.f32 %v1307_v29 }
 0x88d   :  { %1818 = vtanh.f32 %v1300_v61 }
 0x88e   :  { %v1321_v24 = vor.u32 1.1754944e-38, %v1320_v2  ;;  %vm1319_vm10 = vcmp.eq.f32.partialorder %v1318_v43, 8.507059e+37 }
 0x891   :  { %v1815_v0 = vpop.eup %1814 }
 0x892   :  { %v1817_v14 = vpop.eup %1816  ;;  %v1308_v15 = vadd.f32 1.0, %v1815_v0 }
 0x893   :  { %v1310_v16 = vmul.f32 %v1817_v14, %v1307_v29  ;;  %vm1315_vm7 = vweird.f32 %v1817_v14  ;;  %v1819_v44 = vpop.eup %1818 }
 0x894   :  { %1820 = vrcp.f32 %v1308_v15  ;;  %vm1316_vm9 = vmor %vm1314_vm8, %vm1315_vm7  ;;  %v1342_v59 = vrot.slane %v1819_v44, 4  ;;  %v1335_v10 = vand.u32 2147483648, %v1308_v15  ;;  %vm1329_vm12 = vweird.f32 %v1308_v15 }
 0x895   :  { %v1311_v48 = vsub.f32 1.0, %v1310_v16  ;;  %v1333_v28 = vand.u32 2147483647, %v1308_v15 }
 0x896   :  { %v1336_v33 = vor.u32 1.1754944e-38, %v1335_v10 }
 0x897   :  { %v1312_v21 = vmul.f32 %v1817_v14, %v1311_v48  ;;  %vm1334_vm15 = vcmp.eq.f32.partialorder %v1333_v28, 8.507059e+37 }
 0x899   :  { %v1313_v32 = vadd.f32 %v1817_v14, %v1312_v21 }
 0x89a   :  { %v1821_v23 = vpop.eup %1820 }
 0x89b   :  { %v1317_v51 = vsel %vm1316_vm9, %v1817_v14, %v1313_v32  ;;  %v1325_v1 = vmul.f32 %v1821_v23, %v1308_v15  ;;  %vm1330_vm11 = vweird.f32 %v1821_v23 }
 0x89c   :  { %v1322_v57 = vsel %vm1319_vm10, %v1321_v24, %v1317_v51  ;;  %vm1331_vm14 = vmor %vm1329_vm12, %vm1330_vm11 }
 0x89d   :  { %v1326_v4 = vsub.f32 1.0, %v1325_v1  ;;  %v1344_v36 = vmul.f32 %v1342_v59, %v1322_v57  ;;  %v1340_v6 = vmul.f32 %v1322_v57, %v2238_v49  ;;  %v99_v49 = vld [vmem:[#allocation2] sm:$0x1] }
 0x89f   :  { %v1346_v8 = vrot.slane %v1344_v36, 4  ;;  %v1327_v3 = vmul.f32 %v1821_v23, %v1326_v4 }
 0x8a1   :  { %v1348_v25 = vadd.f32 %v1346_v8, %v1340_v6  ;;  %v1328_v27 = vadd.f32 %v1821_v23, %v1327_v3 }
 0x8a3   :  { %1822 = vtanh.f32 %v1348_v25  ;;  %v1332_v7 = vsel %vm1331_vm14, %v1821_v23, %v1328_v27 }
 0x8a4   :  { %v1337_v34 = vsel %vm1334_vm15, %v1336_v33, %v1332_v7 }
 0x8a9   :  { %v1823_v31 = vpop.eup %1822 }
 0x8aa   :  { %v1351_v9 = vrot.slane %v1823_v31, 4 }
 0x8ac   :  { %v1353_v35 = vmul.f32 %v1351_v9, %v1337_v34 }
 0x8ae   :  { %1384 = vrot.lane.b32.xlu0 %v1353_v35, %s1831_s17  ;;  %1444 = vrot.lane.b32.xlu2 %v1353_v35, %s1827_s13 }
 0x8af   :  { %1354 = vrot.lane.b32.xlu1 %v1353_v35, %s1832_s18  ;;  %1717 = vmatpush.msk.msra.mxu3 %vm107_vm0, %v1353_v35 }
 0x8b0   :  { %1718 = vmatmul.msk.f32.vlgmr.msra.gmra.mxu3 %vm644_vm13, %v70_v38 }
 0x8b6   :  { %1501 = vrot.lane.b32.xlu0 %v1353_v35, %s1829_s15  ;;  %1561 = vrot.lane.b32.xlu2 %v1353_v35, %s1828_s14 }
 0x8b7   :  { %1414 = vrot.lane.b32.xlu1 %v1353_v35, %s1830_s16 }
 0x8be   :  { %102 = vperm.xlu0 %1737, %v99_v49   ;;  %1531 = vrot.lane.b32.xlu2 %v1353_v35, %s1826_s12 }
 0x8bf   :  { %1591 = vrot.lane.b32.xlu1 %v1353_v35, %s1825_s11 }
 0x908   :  { %v1445_v5 = vpop.permute.xlu2 %1444 }
 0x909   :  { %v1446_v17 = vmul.f32 %v1445_v5, %v1920_v19  ;;  %v73_v19 = vld [vmem:[%s2385_s6 + $0x7] sm:$0x1] }
 0x90b   :  { %1715 = vmatpush.msk.msra.mxu2 %vm107_vm0, %v1446_v17 }
 0x90c   :  { %1716 = vmatmul.msk.f32.vlgmr.msra.gmra.mxu2 %vm644_vm13, %v69_v37 }
 0x910   :  { %v1562_v39 = vpop.permute.xlu2 %1561 }
 0x911   :  { %v1563_v40 = vmul.f32 %v1562_v39, %v1911_v11 }
 0x913   :  { %1723 = vmatpush.msk.msrb.mxu2 %vm107_vm0, %v1563_v40 }
 0x914   :  { %1724 = vmatmul.msk.f32.vlgmr.msrb.gmra.mxu2 %vm644_vm13, %v73_v19 }
 0x918   :  { %v1532_v11 = vpop.permute.xlu2 %1531 }
 0x920   :  { %v1385_v41 = vpop.permute.xlu0 %1384 }
 0x921   :  { %v1355_v56 = vpop.permute.xlu1 %1354  ;;  %v1386_v42 = vmul.f32 %v1385_v41, %v1924_v22  ;;  %v67_v22 = vld [vmem:[%s2385_s6 + $0x1] sm:$0x1] }
 0x922   :  { %v1356_v45 = vmul.f32 %v1355_v56, %v1929_v26  ;;  %v1533_v26 = vmul.f32 %v1532_v11, %v1913_v12  ;;  %v71_v12 = vld [vmem:[%s2385_s6 + $0x5] sm:$0x1] }
 0x924   :  { %1709 = vmatpush.msk.msrb.mxu0 %vm107_vm0, %v1356_v45 }
 0x925   :  { %1710 = vmatmul.msk.f32.vlgmr.msrb.gmra.mxu0 %vm644_vm13, %v66_v46 }
 0x926   :  { %1711 = vmatpush.msk.msra.mxu0 %vm107_vm0, %v1386_v42 }
 0x928   :  { %v1502_v47 = vpop.permute.xlu0 %1501 }
 0x929   :  { %v1503_v50 = vmul.f32 %v1502_v47, %v1915_v13  ;;  %v1415_v52 = vpop.permute.xlu1 %1414 }
 0x92a   :  { %v1416_v53 = vmul.f32 %v1415_v52, %v1922_v20 }
 0x92b   :  { %1719 = vmatpush.msk.msrb.mxu0 %vm107_vm0, %v1503_v50 }
 0x92c   :  { %1713 = vmatpush.msk.msra.mxu1 %vm107_vm0, %v1416_v53 }
 0x92d   :  { %1712 = vmatmul.msk.f32.vlgmr.msra.gmra.mxu0 %vm644_vm13, %v67_v22  ;;  %1714 = vmatmul.msk.f32.vlgmr.msra.gmra.mxu1 %vm644_vm13, %v68_v60 }
 0x92e   :  { %1721 = vmatpush.msk.msrb.mxu1 %vm107_vm0, %v1533_v26 }
 0x930   :  { %v103_v58 = vpop.permute.xlu0 %102 }
 0x931   :  { %v1592_v13 = vpop.permute.xlu1 %1591  ;;  %v105_v61 = vperm.slane %v103_v58, 0 }
 0x932   :  { %v1593_v20 = vmul.f32 %v2263_v18, %v1592_v13 }
 0x933   :  { %v1497_v16 = vpop.f32.mrf.mxu3 }
 0x934   :  { %1725 = vmatpush.msk.msrb.mxu3 %vm107_vm0, %v1593_v20 }
 0x935   :  { %1720 = vmatmul.msk.f32.vlgmr.msrb.gmra.mxu0 %vm644_vm13, %v71_v12  ;;  %1726 = vmatmul.msk.f32.vlgmr.msrb.gmra.mxu3 %vm644_vm13, %v74_v54 }
 0x936   :  { %1722 = vmatmul.msk.f32.vlgmr.msrb.gmra.mxu1 %vm644_vm13, %v72_v55 }
 0x98f   :  { %v1470_v29 = vpop.f32.mrf.mxu2 }
 0x997   :  { %v1587_v44 = vpop.f32.mrf.mxu2 }
 0x9a2   :  { %v1380_v18 = vpop.f32.mrf.mxu0 }
 0x9a3   :  { %v1383_v62 = vadd.f32 %v1380_v18, %v105_v61 }
 0x9aa   :  { %v1410_v30 = vpop.f32.mrf.mxu0  ;;  %v1440_v14 = vpop.f32.mrf.mxu1 }
 0x9ab   :  { %v1413_v0 = vadd.f32 %v1410_v30, %v1383_v62 }
 0x9ad   :  { %v1443_v15 = vadd.f32 %v1440_v14, %v1413_v0 }
 0x9af   :  { %v1473_v48 = vadd.f32 %v1470_v29, %v1443_v15 }
 0x9b1   :  { %v1500_v2 = vadd.f32 %v1497_v16, %v1473_v48 }
 0x9b2   :  { %v1527_v21 = vpop.f32.mrf.mxu0 }
 0x9b3   :  { %v1530_v43 = vadd.f32 %v1527_v21, %v1500_v2  ;;  %v1557_v63 = vpop.f32.mrf.mxu1 }
 0x9b5   :  { %v1560_v32 = vadd.f32 %v1557_v63, %v1530_v43 }
 0x9b7   :  { %v1590_v23 = vadd.f32 %v1587_v44, %v1560_v32 }
 0x9b8   :  { %v1617_v24 = vpop.f32.mrf.mxu3 }
 0x9b9   :  { %v1620_v51 = vadd.f32 %v1617_v24, %v1590_v23 }
 0x9bb   :  { %1621 = vst [vmem:[%s2386_s9] sm:$0x1] %v1620_v51 }

</bundles_post_ra>
